<compile_context>
chip_gen: v5e
topology: v5e:2x2
jax: 0.10.0
libtpu: 0.0.40
codegen_flags: <defaults>
</compile_context>

<pallas_src>
import functools

import jax
import jax.numpy as jnp
from jax import lax
from jax.experimental import pallas as pl
from jax.experimental.pallas import tpu as pltpu


def _round_up(x, m):
    return (x + m - 1) // m * m


def _encoder_gru_kernel(idx_ref,      # (B*S,) int32 token ids (SMEM, scalar prefetch)
                        emb_ref,      # (V, Hp)   f32 embedding table (resident)
                        h0_ref,       # (B, Hp)   f32 initial hidden states (resident)
                        wih_ref,      # (Hp, 3Hp) packed W_ih (matmul dtype)
                        whh_ref,      # (Hp, 3Hp) packed W_hh (matmul dtype)
                        bih_ref,      # (1, 3Hp)  f32 packed input bias
                        bhh_ref,      # (1, 3Hp)  f32 packed hidden bias
                        out_ref,      # (Sp, Hp)  f32 per-step hidden, this sequence
                        x_scratch,    # (S, Hp)   f32 gathered embeddings
                        gi_scratch,   # (S, 3Hp)  f32 hoisted input projection
                        *, seq_len, hidden_pad, matmul_dtype):
    Hp = hidden_pad
    b = pl.program_id(0)

    # ---- Phase 1: gather this sequence's embedding rows (token-indexed). ----
    for t in range(seq_len):                                  # static unroll (S small)
        tok = idx_ref[b * seq_len + t]                        # scalar id from SMEM
        x_scratch[pl.ds(t, 1), :] = emb_ref[pl.ds(tok, 1), :]

    # ---- Phase 2: hoisted input projection (token-only, off the serial path).
    gi_scratch[...] = (
        jnp.dot(x_scratch[...].astype(matmul_dtype), wih_ref[...],
                preferred_element_type=jnp.float32)
        + bih_ref[...])

    # ---- Phase 3: serial GRU recurrence, unrolled in-kernel. ----
    h0 = h0_ref[pl.ds(b, 1), :]                               # (1, Hp) f32

    def step(t, h):
        gi = gi_scratch[pl.ds(t, 1), :]                       # precomputed, (1, 3Hp)
        gh = (jnp.dot(h.astype(matmul_dtype), whh_ref[...],
                      preferred_element_type=jnp.float32)
              + bhh_ref[...])
        # Gate slabs are 128-lane aligned: gate g lives in columns [g*Hp,(g+1)*Hp).
        i_r, i_z, i_n = gi[:, 0:Hp], gi[:, Hp:2 * Hp], gi[:, 2 * Hp:3 * Hp]
        h_r, h_z, h_n = gh[:, 0:Hp], gh[:, Hp:2 * Hp], gh[:, 2 * Hp:3 * Hp]
        r = jax.nn.sigmoid(i_r + h_r)
        z = jax.nn.sigmoid(i_z + h_z)
        n = jnp.tanh(i_n + r * h_n)
        h_new = n + z * (h - n)                               # == (1-z)*n + z*h
        out_ref[pl.ds(t, 1), :] = h_new                       # padded lanes stay 0
        return h_new

    lax.fori_loop(0, seq_len, step, h0, unroll=True)


def pack_params(params, hidden_size, matmul_dtype=jnp.float32):
    """One-time repack of PyTorch-layout params into the lane-dense TPU layout.

    matmul_dtype: dtype of the packed weight matrices (MXU operands).  Use
    jnp.bfloat16 on v6e/v7x for fewer MXU passes; accumulation, biases and all
    gate math stay f32 either way.
    """
    H = hidden_size
    Hp = _round_up(max(H, 128), 128)                          # 128 for H=32

    emb = params["embedding"].astype(jnp.float32)             # (V, H)
    V = emb.shape[0]
    emb_p = jnp.zeros((V, Hp), jnp.float32).at[:, :H].set(emb)

    def pack_w(w):                                            # (3H, H) -> (Hp, 3Hp)
        wt = w.astype(jnp.float32).T                          # x @ W.T == x @ wt
        out = jnp.zeros((Hp, 3 * Hp), jnp.float32)
        for g in range(3):
            out = out.at[:H, g * Hp:g * Hp + H].set(wt[:, g * H:(g + 1) * H])
        return out.astype(matmul_dtype)                       # padded cols stay 0.0

    def pack_b(b):                                            # (3H,) -> (1, 3Hp)
        out = jnp.zeros((1, 3 * Hp), jnp.float32)
        for g in range(3):
            out = out.at[0, g * Hp:g * Hp + H].set(
                b.astype(jnp.float32)[g * H:(g + 1) * H])
        return out

    return {
        "emb": emb_p,
        "w_ih": pack_w(params["w_ih"]),
        "w_hh": pack_w(params["w_hh"]),
        "b_ih": pack_b(params["b_ih"]),
        "b_hh": pack_b(params["b_hh"]),
    }


@functools.partial(jax.jit, static_argnames=("hidden_size",))
def encoder_rnn_forward_batched(tokens, hidden0, packed, *, hidden_size):
    """Run B independent EncoderRNN sequences in ONE pallas_call.

    tokens:  (B, S) int token ids.
    hidden0: (B, H) initial hidden states.
    Returns (outputs, hidden): (B, S, H) per-step GRU outputs and (B, H) final
    hidden (per step output == hidden, as in the PyTorch module).
    """
    H = hidden_size
    Hp = packed["emb"].shape[1]
    B, S = tokens.shape
    Sp = max(_round_up(S, 8), 8)                              # sublane-aligned out rows

    idx = tokens.reshape(B * S).astype(jnp.int32)
    h0 = jnp.zeros((B, Hp), jnp.float32).at[:, :H].set(
        hidden0.reshape(B, H).astype(jnp.float32))

    mm_dtype = packed["w_ih"].dtype
    kernel = functools.partial(_encoder_gru_kernel, seq_len=S,
                               hidden_pad=Hp, matmul_dtype=mm_dtype)

    grid_spec = pltpu.PrefetchScalarGridSpec(
        num_scalar_prefetch=1,
        grid=(B,),                                            # independent sequences
        in_specs=[
            # All operands are grid-invariant (constant block index) -> DMA'd
            # once, resident in VMEM for the whole call (<1 MiB total).
            pl.BlockSpec(packed["emb"].shape, lambda b, idx_ref: (0, 0)),
            pl.BlockSpec((B, Hp),             lambda b, idx_ref: (0, 0)),
            pl.BlockSpec((Hp, 3 * Hp),        lambda b, idx_ref: (0, 0)),
            pl.BlockSpec((Hp, 3 * Hp),        lambda b, idx_ref: (0, 0)),
            pl.BlockSpec((1, 3 * Hp),         lambda b, idx_ref: (0, 0)),
            pl.BlockSpec((1, 3 * Hp),         lambda b, idx_ref: (0, 0)),
        ],
        # One lane-dense (Sp, Hp) slab per sequence, written back once.
        out_specs=pl.BlockSpec((Sp, Hp), lambda b, idx_ref: (b, 0)),
        scratch_shapes=[pltpu.VMEM((S, Hp), jnp.float32),
                        pltpu.VMEM((S, 3 * Hp), jnp.float32)],
    )

    outs_padded = pl.pallas_call(
        kernel,
        grid_spec=grid_spec,
        out_shape=jax.ShapeDtypeStruct((B * Sp, Hp), jnp.float32),
        compiler_params=pltpu.CompilerParams(
            dimension_semantics=("parallel",)),               # batch axis -> both TCs
    )(idx, packed["emb"], h0, packed["w_ih"], packed["w_hh"],
      packed["b_ih"], packed["b_hh"])

    outs = outs_padded.reshape(B, Sp, Hp)[:, :S, :H]
    hidden_final = outs[:, -1, :]
    return outs, hidden_final


def encoder_rnn_forward_seq(tokens, hidden0, packed, *, hidden_size):
    """Single-sequence encoder pass (PyTorch shapes: (S,1,H) outputs, (1,1,H) hidden)."""
    S = tokens.shape[0]
    outs, h = encoder_rnn_forward_batched(
        tokens.reshape(1, S), hidden0.reshape(1, hidden_size), packed,
        hidden_size=hidden_size)
    return outs.reshape(S, 1, hidden_size), h.reshape(1, 1, hidden_size)


def encoder_rnn_forward(token_idx, hidden, packed, *, hidden_size):
    """Exact EncoderRNN.forward(input, hidden): one token step -> (output, hidden)."""
    out, h = encoder_rnn_forward_seq(jnp.reshape(token_idx, (1,)), hidden, packed,
                                     hidden_size=hidden_size)
    return out.reshape(1, 1, hidden_size), h


# ----------------------------- reference ------------------------------------


def _reference_step(tok, h, params, H):
    x = params["embedding"][tok].reshape(1, H)
    gi = x @ params["w_ih"].T + params["b_ih"]
    gh = h @ params["w_hh"].T + params["b_hh"]
    i_r, i_z, i_n = gi[:, :H], gi[:, H:2 * H], gi[:, 2 * H:]
    h_r, h_z, h_n = gh[:, :H], gh[:, H:2 * H], gh[:, 2 * H:]
    r = jax.nn.sigmoid(i_r + h_r)
    z = jax.nn.sigmoid(i_z + h_z)
    n = jnp.tanh(i_n + r * h_n)
    return (1.0 - z) * n + z * h


def _reference_forward_seq(tokens, hidden0, params, H):
    """Pure-JAX loop matching torch.nn.GRU step semantics."""
    h = hidden0.reshape(1, H)
    outs = []
    for t in range(tokens.shape[0]):
        h = _reference_step(tokens[t], h, params, H)
        outs.append(h)
    return jnp.stack(outs).reshape(-1, 1, H), h.reshape(1, 1, H)


def init_params(key, input_size, hidden_size):
    """Deterministic synthetic parameters (shapes match nn.Embedding / nn.GRU)."""
    k = jax.random.split(key, 5)
    scale = 1.0 / jnp.sqrt(hidden_size)
    return {
        "embedding": jax.random.normal(k[0], (input_size, hidden_size), jnp.float32),
        "w_ih": scale * jax.random.normal(k[1], (3 * hidden_size, hidden_size), jnp.float32),
        "w_hh": scale * jax.random.normal(k[2], (3 * hidden_size, hidden_size), jnp.float32),
        "b_ih": scale * jax.random.normal(k[3], (3 * hidden_size,), jnp.float32),
        "b_hh": scale * jax.random.normal(k[4], (3 * hidden_size,), jnp.float32),
    }


if __name__ == "__main__":
    INPUT_SIZE = 16     # vocab size
    HIDDEN_SIZE = 32
    SEQ_LEN = 8
    BATCH = 2

    key = jax.random.PRNGKey(0)
    params = init_params(key, INPUT_SIZE, HIDDEN_SIZE)

    tokens = jax.random.randint(jax.random.PRNGKey(1), (BATCH, SEQ_LEN), 0,
                                INPUT_SIZE, dtype=jnp.int32)
    hidden0 = jnp.zeros((BATCH, HIDDEN_SIZE), jnp.float32)    # initHidden() per sequence

    # Pure-JAX reference (per sequence, matching torch GRU semantics).
    ref_outs, ref_h = [], []
    for b in range(BATCH):
        o, h = _reference_forward_seq(tokens[b], hidden0[b:b + 1], params, HIDDEN_SIZE)
        ref_outs.append(o.reshape(SEQ_LEN, HIDDEN_SIZE))
        ref_h.append(h.reshape(HIDDEN_SIZE))
    ref_outs = jnp.stack(ref_outs)
    ref_h = jnp.stack(ref_h)

    # ---- f32 MXU-operand path (tight numerical check) ----
    packed_f32 = pack_params(params, HIDDEN_SIZE, matmul_dtype=jnp.float32)
    outs, hfin = encoder_rnn_forward_batched(tokens, hidden0, packed_f32,
                                             hidden_size=HIDDEN_SIZE)
    outs = jax.block_until_ready(outs)
    hfin = jax.block_until_ready(hfin)
    assert outs.shape == (BATCH, SEQ_LEN, HIDDEN_SIZE)
    assert hfin.shape == (BATCH, HIDDEN_SIZE)
    assert jnp.allclose(outs, ref_outs, atol=1e-5, rtol=1e-5)
    assert jnp.allclose(hfin, ref_h, atol=1e-5, rtol=1e-5)

    # ---- bf16 MXU-operand / f32-accumulate path (v6e/v7x recommendation) ----
    packed_bf16 = pack_params(params, HIDDEN_SIZE, matmul_dtype=jnp.bfloat16)
    outs_bf, hfin_bf = encoder_rnn_forward_batched(tokens, hidden0, packed_bf16,
                                                   hidden_size=HIDDEN_SIZE)
    outs_bf = jax.block_until_ready(outs_bf)
    assert jnp.allclose(outs_bf, ref_outs, atol=5e-2, rtol=5e-2)
    assert jnp.allclose(hfin_bf, ref_h, atol=5e-2, rtol=5e-2)

    # ---- Single-token call: exact EncoderRNN.forward(input, hidden) semantics ----
    h1_init = jnp.zeros((1, 1, HIDDEN_SIZE), jnp.float32)
    out1, h1 = encoder_rnn_forward(tokens[0, :1], h1_init, packed_f32,
                                   hidden_size=HIDDEN_SIZE)
    out1 = jax.block_until_ready(out1)
    ref_o1, ref_h1 = _reference_forward_seq(tokens[0, :1], h1_init, params, HIDDEN_SIZE)
    assert out1.shape == (1, 1, HIDDEN_SIZE) and h1.shape == (1, 1, HIDDEN_SIZE)
    assert jnp.allclose(out1, ref_o1, atol=1e-5, rtol=1e-5)
    assert jnp.allclose(h1, ref_h1, atol=1e-5, rtol=1e-5)

    print("KERNEL_OK")
</pallas_src>

<mosaic_0001>
module attributes {stable_mosaic.version = 11 : i64} {
  func.func @_encoder_gru_kernel(%arg0: i32, %arg1: memref<16xi32, #tpu.memory_space<smem>>, %arg2: memref<16x128xf32, #tpu.memory_space<vmem>>, %arg3: memref<2x128xf32, #tpu.memory_space<vmem>>, %arg4: memref<128x384xf32, #tpu.memory_space<vmem>>, %arg5: memref<128x384xf32, #tpu.memory_space<vmem>>, %arg6: memref<1x384xf32, #tpu.memory_space<vmem>>, %arg7: memref<1x384xf32, #tpu.memory_space<vmem>>, %arg8: memref<8x128xf32, #tpu.memory_space<vmem>>, %arg9: memref<8x128xf32, #tpu.memory_space<vmem>>, %arg10: memref<8x384xf32, #tpu.memory_space<vmem>>) attributes {dimension_semantics = [#tpu.dimension_semantics<parallel>], iteration_bounds = array<i64: 2>, scalar_prefetch = 1 : i64, scratch_operands = 2 : i64, tpu.core_type = #tpu.core_type<tc>, window_params = [{pipeline_mode = #tpu.pipeline_mode<synchronous>, transform_indices = @transform_0, window_bounds = array<i64: 16, 128>}, {pipeline_mode = #tpu.pipeline_mode<synchronous>, transform_indices = @transform_1, window_bounds = array<i64: 2, 128>}, {pipeline_mode = #tpu.pipeline_mode<synchronous>, transform_indices = @transform_2, window_bounds = array<i64: 128, 384>}, {pipeline_mode = #tpu.pipeline_mode<synchronous>, transform_indices = @transform_3, window_bounds = array<i64: 128, 384>}, {pipeline_mode = #tpu.pipeline_mode<synchronous>, transform_indices = @transform_4, window_bounds = array<i64: 1, 384>}, {pipeline_mode = #tpu.pipeline_mode<synchronous>, transform_indices = @transform_5, window_bounds = array<i64: 1, 384>}, {transform_indices = @transform_6, window_bounds = array<i64: 8, 128>}]} {
    %c8_i32 = arith.constant 8 : i32
    %0 = arith.muli %arg0, %c8_i32 : i32
    %c0_i32 = arith.constant 0 : i32
    %1 = arith.addi %0, %c0_i32 : i32
    %2 = arith.index_cast %1 : i32 to index
    %3 = memref.load %arg1[%2] : memref<16xi32, #tpu.memory_space<smem>>
    %4 = arith.index_cast %3 : i32 to index
    %c0 = arith.constant 0 : index
    %5 = vector.load %arg2[%4, %c0] : memref<16x128xf32, #tpu.memory_space<vmem>>, vector<1x128xf32>
    %c0_0 = arith.constant 0 : index
    %c0_1 = arith.constant 0 : index
    %6 = vector.load %arg9[%c0_0, %c0_1] : memref<8x128xf32, #tpu.memory_space<vmem>>, vector<1x128xf32>
    tpu.vector_store %arg9[%c0_0, %c0_1], %5 {strides = array<i32>} : memref<8x128xf32, #tpu.memory_space<vmem>>, vector<1x128xf32>,
    %c8_i32_2 = arith.constant 8 : i32
    %7 = arith.muli %arg0, %c8_i32_2 : i32
    %c1_i32 = arith.constant 1 : i32
    %8 = arith.addi %7, %c1_i32 : i32
    %9 = arith.index_cast %8 : i32 to index
    %10 = memref.load %arg1[%9] : memref<16xi32, #tpu.memory_space<smem>>
    %11 = arith.index_cast %10 : i32 to index
    %c0_3 = arith.constant 0 : index
    %12 = vector.load %arg2[%11, %c0_3] : memref<16x128xf32, #tpu.memory_space<vmem>>, vector<1x128xf32>
    %c1 = arith.constant 1 : index
    %c0_4 = arith.constant 0 : index
    %13 = vector.load %arg9[%c1, %c0_4] : memref<8x128xf32, #tpu.memory_space<vmem>>, vector<1x128xf32>
    tpu.vector_store %arg9[%c1, %c0_4], %12 {strides = array<i32>} : memref<8x128xf32, #tpu.memory_space<vmem>>, vector<1x128xf32>,
    %c8_i32_5 = arith.constant 8 : i32
    %14 = arith.muli %arg0, %c8_i32_5 : i32
    %c2_i32 = arith.constant 2 : i32
    %15 = arith.addi %14, %c2_i32 : i32
    %16 = arith.index_cast %15 : i32 to index
    %17 = memref.load %arg1[%16] : memref<16xi32, #tpu.memory_space<smem>>
    %18 = arith.index_cast %17 : i32 to index
    %c0_6 = arith.constant 0 : index
    %19 = vector.load %arg2[%18, %c0_6] : memref<16x128xf32, #tpu.memory_space<vmem>>, vector<1x128xf32>
    %c2 = arith.constant 2 : index
    %c0_7 = arith.constant 0 : index
    %20 = vector.load %arg9[%c2, %c0_7] : memref<8x128xf32, #tpu.memory_space<vmem>>, vector<1x128xf32>
    tpu.vector_store %arg9[%c2, %c0_7], %19 {strides = array<i32>} : memref<8x128xf32, #tpu.memory_space<vmem>>, vector<1x128xf32>,
    %c8_i32_8 = arith.constant 8 : i32
    %21 = arith.muli %arg0, %c8_i32_8 : i32
    %c3_i32 = arith.constant 3 : i32
    %22 = arith.addi %21, %c3_i32 : i32
    %23 = arith.index_cast %22 : i32 to index
    %24 = memref.load %arg1[%23] : memref<16xi32, #tpu.memory_space<smem>>
    %25 = arith.index_cast %24 : i32 to index
    %c0_9 = arith.constant 0 : index
    %26 = vector.load %arg2[%25, %c0_9] : memref<16x128xf32, #tpu.memory_space<vmem>>, vector<1x128xf32>
    %c3 = arith.constant 3 : index
    %c0_10 = arith.constant 0 : index
    %27 = vector.load %arg9[%c3, %c0_10] : memref<8x128xf32, #tpu.memory_space<vmem>>, vector<1x128xf32>
    tpu.vector_store %arg9[%c3, %c0_10], %26 {strides = array<i32>} : memref<8x128xf32, #tpu.memory_space<vmem>>, vector<1x128xf32>,
    %c8_i32_11 = arith.constant 8 : i32
    %28 = arith.muli %arg0, %c8_i32_11 : i32
    %c4_i32 = arith.constant 4 : i32
    %29 = arith.addi %28, %c4_i32 : i32
    %30 = arith.index_cast %29 : i32 to index
    %31 = memref.load %arg1[%30] : memref<16xi32, #tpu.memory_space<smem>>
    %32 = arith.index_cast %31 : i32 to index
    %c0_12 = arith.constant 0 : index
    %33 = vector.load %arg2[%32, %c0_12] : memref<16x128xf32, #tpu.memory_space<vmem>>, vector<1x128xf32>
    %c4 = arith.constant 4 : index
    %c0_13 = arith.constant 0 : index
    %34 = vector.load %arg9[%c4, %c0_13] : memref<8x128xf32, #tpu.memory_space<vmem>>, vector<1x128xf32>
    tpu.vector_store %arg9[%c4, %c0_13], %33 {strides = array<i32>} : memref<8x128xf32, #tpu.memory_space<vmem>>, vector<1x128xf32>,
    %c8_i32_14 = arith.constant 8 : i32
    %35 = arith.muli %arg0, %c8_i32_14 : i32
    %c5_i32 = arith.constant 5 : i32
    %36 = arith.addi %35, %c5_i32 : i32
    %37 = arith.index_cast %36 : i32 to index
    %38 = memref.load %arg1[%37] : memref<16xi32, #tpu.memory_space<smem>>
    %39 = arith.index_cast %38 : i32 to index
    %c0_15 = arith.constant 0 : index
    %40 = vector.load %arg2[%39, %c0_15] : memref<16x128xf32, #tpu.memory_space<vmem>>, vector<1x128xf32>
    %c5 = arith.constant 5 : index
    %c0_16 = arith.constant 0 : index
    %41 = vector.load %arg9[%c5, %c0_16] : memref<8x128xf32, #tpu.memory_space<vmem>>, vector<1x128xf32>
    tpu.vector_store %arg9[%c5, %c0_16], %40 {strides = array<i32>} : memref<8x128xf32, #tpu.memory_space<vmem>>, vector<1x128xf32>,
    %c8_i32_17 = arith.constant 8 : i32
    %42 = arith.muli %arg0, %c8_i32_17 : i32
    %c6_i32 = arith.constant 6 : i32
    %43 = arith.addi %42, %c6_i32 : i32
    %44 = arith.index_cast %43 : i32 to index
    %45 = memref.load %arg1[%44] : memref<16xi32, #tpu.memory_space<smem>>
    %46 = arith.index_cast %45 : i32 to index
    %c0_18 = arith.constant 0 : index
    %47 = vector.load %arg2[%46, %c0_18] : memref<16x128xf32, #tpu.memory_space<vmem>>, vector<1x128xf32>
    %c6 = arith.constant 6 : index
    %c0_19 = arith.constant 0 : index
    %48 = vector.load %arg9[%c6, %c0_19] : memref<8x128xf32, #tpu.memory_space<vmem>>, vector<1x128xf32>
    tpu.vector_store %arg9[%c6, %c0_19], %47 {strides = array<i32>} : memref<8x128xf32, #tpu.memory_space<vmem>>, vector<1x128xf32>,
    %c8_i32_20 = arith.constant 8 : i32
    %49 = arith.muli %arg0, %c8_i32_20 : i32
    %c7_i32 = arith.constant 7 : i32
    %50 = arith.addi %49, %c7_i32 : i32
    %51 = arith.index_cast %50 : i32 to index
    %52 = memref.load %arg1[%51] : memref<16xi32, #tpu.memory_space<smem>>
    %53 = arith.index_cast %52 : i32 to index
    %c0_21 = arith.constant 0 : index
    %54 = vector.load %arg2[%53, %c0_21] : memref<16x128xf32, #tpu.memory_space<vmem>>, vector<1x128xf32>
    %c7 = arith.constant 7 : index
    %c0_22 = arith.constant 0 : index
    %55 = vector.load %arg9[%c7, %c0_22] : memref<8x128xf32, #tpu.memory_space<vmem>>, vector<1x128xf32>
    tpu.vector_store %arg9[%c7, %c0_22], %54 {strides = array<i32>} : memref<8x128xf32, #tpu.memory_space<vmem>>, vector<1x128xf32>,
    %c0_23 = arith.constant 0 : index
    %c0_24 = arith.constant 0 : index
    %56 = vector.load %arg9[%c0_23, %c0_24] : memref<8x128xf32, #tpu.memory_space<vmem>>, vector<8x128xf32>
    %c0_25 = arith.constant 0 : index
    %c0_26 = arith.constant 0 : index
    %57 = vector.load %arg4[%c0_25, %c0_26] : memref<128x384xf32, #tpu.memory_space<vmem>>, vector<128x384xf32>
    %cst = arith.constant dense<0.000000e+00> : vector<8x384xf32>
    %58 = tpu.matmul %56, %57, %cst {dimension_numbers = #tpu.dot_dimension_numbers<[1], [0], [0], [1], [0, 0, 1, 1], [], []>} : vector<8x128xf32>, vector<128x384xf32>, vector<8x384xf32> -> vector<8x384xf32>
    %c0_27 = arith.constant 0 : index
    %c0_28 = arith.constant 0 : index
    %59 = vector.load %arg6[%c0_27, %c0_28] : memref<1x384xf32, #tpu.memory_space<vmem>>, vector<1x384xf32>
    %60 = vector.broadcast %59 : vector<1x384xf32> to vector<8x384xf32>
    %61 = arith.addf %58, %60 : vector<8x384xf32>
    %c0_29 = arith.constant 0 : index
    %c0_30 = arith.constant 0 : index
    %62 = vector.load %arg10[%c0_29, %c0_30] : memref<8x384xf32, #tpu.memory_space<vmem>>, vector<8x384xf32>
    tpu.vector_store %arg10[%c0_29, %c0_30], %61 {strides = array<i32>} : memref<8x384xf32, #tpu.memory_space<vmem>>, vector<8x384xf32>,
    %63 = arith.index_cast %arg0 : i32 to index
    %c0_31 = arith.constant 0 : index
    %64 = vector.load %arg3[%63, %c0_31] : memref<2x128xf32, #tpu.memory_space<vmem>>, vector<1x128xf32>
    %c0_i32_32 = arith.constant 0 : i32
    %65 = arith.index_cast %c0_i32_32 : i32 to index
    %c0_33 = arith.constant 0 : index
    %66 = vector.load %arg10[%65, %c0_33] : memref<8x384xf32, #tpu.memory_space<vmem>>, vector<1x384xf32>
    %c0_34 = arith.constant 0 : index
    %c0_35 = arith.constant 0 : index
    %67 = vector.load %arg5[%c0_34, %c0_35] : memref<128x384xf32, #tpu.memory_space<vmem>>, vector<128x384xf32>
    %cst_36 = arith.constant dense<0.000000e+00> : vector<1x384xf32>
    %68 = tpu.matmul %64, %67, %cst_36 {dimension_numbers = #tpu.dot_dimension_numbers<[1], [0], [0], [1], [0, 0, 1, 1], [], []>} : vector<1x128xf32>, vector<128x384xf32>, vector<1x384xf32> -> vector<1x384xf32>
    %c0_37 = arith.constant 0 : index
    %c0_38 = arith.constant 0 : index
    %69 = vector.load %arg7[%c0_37, %c0_38] : memref<1x384xf32, #tpu.memory_space<vmem>>, vector<1x384xf32>
    %70 = arith.addf %68, %69 : vector<1x384xf32>
    %71 = vector.extract_strided_slice %66 {offsets = [0, 0], sizes = [1, 128], strides = [1, 1]} : vector<1x384xf32> to vector<1x128xf32>
    %72 = vector.extract_strided_slice %66 {offsets = [0, 128], sizes = [1, 128], strides = [1, 1]} : vector<1x384xf32> to vector<1x128xf32>
    %73 = vector.extract_strided_slice %66 {offsets = [0, 256], sizes = [1, 128], strides = [1, 1]} : vector<1x384xf32> to vector<1x128xf32>
    %74 = vector.extract_strided_slice %70 {offsets = [0, 0], sizes = [1, 128], strides = [1, 1]} : vector<1x384xf32> to vector<1x128xf32>
    %75 = vector.extract_strided_slice %70 {offsets = [0, 128], sizes = [1, 128], strides = [1, 1]} : vector<1x384xf32> to vector<1x128xf32>
    %76 = vector.extract_strided_slice %70 {offsets = [0, 256], sizes = [1, 128], strides = [1, 1]} : vector<1x384xf32> to vector<1x128xf32>
    %77 = arith.addf %71, %74 : vector<1x128xf32>
    %78 = arith.negf %77 : vector<1x128xf32>
    %79 = math.exp %78 : vector<1x128xf32>
    %cst_39 = arith.constant 1.000000e+00 : f32
    %80 = vector.broadcast %cst_39 : f32 to vector<1x128xf32>
    %81 = arith.addf %80, %79 : vector<1x128xf32>
    %82 = arith.divf %80, %81 : vector<1x128xf32>
    %83 = arith.addf %72, %75 : vector<1x128xf32>
    %84 = arith.negf %83 : vector<1x128xf32>
    %85 = math.exp %84 : vector<1x128xf32>
    %cst_40 = arith.constant 1.000000e+00 : f32
    %86 = vector.broadcast %cst_40 : f32 to vector<1x128xf32>
    %87 = arith.addf %86, %85 : vector<1x128xf32>
    %88 = arith.divf %86, %87 : vector<1x128xf32>
    %89 = arith.mulf %82, %76 : vector<1x128xf32>
    %90 = arith.addf %73, %89 : vector<1x128xf32>
    %91 = math.tanh %90 : vector<1x128xf32>
    %92 = arith.subf %64, %91 : vector<1x128xf32>
    %93 = arith.mulf %88, %92 : vector<1x128xf32>
    %94 = arith.addf %91, %93 : vector<1x128xf32>
    %95 = arith.index_cast %c0_i32_32 : i32 to index
    %c0_41 = arith.constant 0 : index
    %96 = vector.load %arg8[%95, %c0_41] : memref<8x128xf32, #tpu.memory_space<vmem>>, vector<1x128xf32>
    tpu.vector_store %arg8[%95, %c0_41], %94 {strides = array<i32>} : memref<8x128xf32, #tpu.memory_space<vmem>>, vector<1x128xf32>,
    %c1_i32_42 = arith.constant 1 : i32
    %97 = arith.index_cast %c1_i32_42 : i32 to index
    %c0_43 = arith.constant 0 : index
    %98 = vector.load %arg10[%97, %c0_43] : memref<8x384xf32, #tpu.memory_space<vmem>>, vector<1x384xf32>
    %c0_44 = arith.constant 0 : index
    %c0_45 = arith.constant 0 : index
    %99 = vector.load %arg5[%c0_44, %c0_45] : memref<128x384xf32, #tpu.memory_space<vmem>>, vector<128x384xf32>
    %cst_46 = arith.constant dense<0.000000e+00> : vector<1x384xf32>
    %100 = tpu.matmul %94, %99, %cst_46 {dimension_numbers = #tpu.dot_dimension_numbers<[1], [0], [0], [1], [0, 0, 1, 1], [], []>} : vector<1x128xf32>, vector<128x384xf32>, vector<1x384xf32> -> vector<1x384xf32>
    %c0_47 = arith.constant 0 : index
    %c0_48 = arith.constant 0 : index
    %101 = vector.load %arg7[%c0_47, %c0_48] : memref<1x384xf32, #tpu.memory_space<vmem>>, vector<1x384xf32>
    %102 = arith.addf %100, %101 : vector<1x384xf32>
    %103 = vector.extract_strided_slice %98 {offsets = [0, 0], sizes = [1, 128], strides = [1, 1]} : vector<1x384xf32> to vector<1x128xf32>
    %104 = vector.extract_strided_slice %98 {offsets = [0, 128], sizes = [1, 128], strides = [1, 1]} : vector<1x384xf32> to vector<1x128xf32>
    %105 = vector.extract_strided_slice %98 {offsets = [0, 256], sizes = [1, 128], strides = [1, 1]} : vector<1x384xf32> to vector<1x128xf32>
    %106 = vector.extract_strided_slice %102 {offsets = [0, 0], sizes = [1, 128], strides = [1, 1]} : vector<1x384xf32> to vector<1x128xf32>
    %107 = vector.extract_strided_slice %102 {offsets = [0, 128], sizes = [1, 128], strides = [1, 1]} : vector<1x384xf32> to vector<1x128xf32>
    %108 = vector.extract_strided_slice %102 {offsets = [0, 256], sizes = [1, 128], strides = [1, 1]} : vector<1x384xf32> to vector<1x128xf32>
    %109 = arith.addf %103, %106 : vector<1x128xf32>
    %110 = arith.negf %109 : vector<1x128xf32>
    %111 = math.exp %110 : vector<1x128xf32>
    %cst_49 = arith.constant 1.000000e+00 : f32
    %112 = vector.broadcast %cst_49 : f32 to vector<1x128xf32>
    %113 = arith.addf %112, %111 : vector<1x128xf32>
    %114 = arith.divf %112, %113 : vector<1x128xf32>
    %115 = arith.addf %104, %107 : vector<1x128xf32>
    %116 = arith.negf %115 : vector<1x128xf32>
    %117 = math.exp %116 : vector<1x128xf32>
    %cst_50 = arith.constant 1.000000e+00 : f32
    %118 = vector.broadcast %cst_50 : f32 to vector<1x128xf32>
    %119 = arith.addf %118, %117 : vector<1x128xf32>
    %120 = arith.divf %118, %119 : vector<1x128xf32>
    %121 = arith.mulf %114, %108 : vector<1x128xf32>
    %122 = arith.addf %105, %121 : vector<1x128xf32>
    %123 = math.tanh %122 : vector<1x128xf32>
    %124 = arith.subf %94, %123 : vector<1x128xf32>
    %125 = arith.mulf %120, %124 : vector<1x128xf32>
    %126 = arith.addf %123, %125 : vector<1x128xf32>
    %127 = arith.index_cast %c1_i32_42 : i32 to index
    %c0_51 = arith.constant 0 : index
    %128 = vector.load %arg8[%127, %c0_51] : memref<8x128xf32, #tpu.memory_space<vmem>>, vector<1x128xf32>
    tpu.vector_store %arg8[%127, %c0_51], %126 {strides = array<i32>} : memref<8x128xf32, #tpu.memory_space<vmem>>, vector<1x128xf32>,
    %c2_i32_52 = arith.constant 2 : i32
    %129 = arith.index_cast %c2_i32_52 : i32 to index
    %c0_53 = arith.constant 0 : index
    %130 = vector.load %arg10[%129, %c0_53] : memref<8x384xf32, #tpu.memory_space<vmem>>, vector<1x384xf32>
    %c0_54 = arith.constant 0 : index
    %c0_55 = arith.constant 0 : index
    %131 = vector.load %arg5[%c0_54, %c0_55] : memref<128x384xf32, #tpu.memory_space<vmem>>, vector<128x384xf32>
    %cst_56 = arith.constant dense<0.000000e+00> : vector<1x384xf32>
    %132 = tpu.matmul %126, %131, %cst_56 {dimension_numbers = #tpu.dot_dimension_numbers<[1], [0], [0], [1], [0, 0, 1, 1], [], []>} : vector<1x128xf32>, vector<128x384xf32>, vector<1x384xf32> -> vector<1x384xf32>
    %c0_57 = arith.constant 0 : index
    %c0_58 = arith.constant 0 : index
    %133 = vector.load %arg7[%c0_57, %c0_58] : memref<1x384xf32, #tpu.memory_space<vmem>>, vector<1x384xf32>
    %134 = arith.addf %132, %133 : vector<1x384xf32>
    %135 = vector.extract_strided_slice %130 {offsets = [0, 0], sizes = [1, 128], strides = [1, 1]} : vector<1x384xf32> to vector<1x128xf32>
    %136 = vector.extract_strided_slice %130 {offsets = [0, 128], sizes = [1, 128], strides = [1, 1]} : vector<1x384xf32> to vector<1x128xf32>
    %137 = vector.extract_strided_slice %130 {offsets = [0, 256], sizes = [1, 128], strides = [1, 1]} : vector<1x384xf32> to vector<1x128xf32>
    %138 = vector.extract_strided_slice %134 {offsets = [0, 0], sizes = [1, 128], strides = [1, 1]} : vector<1x384xf32> to vector<1x128xf32>
    %139 = vector.extract_strided_slice %134 {offsets = [0, 128], sizes = [1, 128], strides = [1, 1]} : vector<1x384xf32> to vector<1x128xf32>
    %140 = vector.extract_strided_slice %134 {offsets = [0, 256], sizes = [1, 128], strides = [1, 1]} : vector<1x384xf32> to vector<1x128xf32>
    %141 = arith.addf %135, %138 : vector<1x128xf32>
    %142 = arith.negf %141 : vector<1x128xf32>
    %143 = math.exp %142 : vector<1x128xf32>
    %cst_59 = arith.constant 1.000000e+00 : f32
    %144 = vector.broadcast %cst_59 : f32 to vector<1x128xf32>
    %145 = arith.addf %144, %143 : vector<1x128xf32>
    %146 = arith.divf %144, %145 : vector<1x128xf32>
    %147 = arith.addf %136, %139 : vector<1x128xf32>
    %148 = arith.negf %147 : vector<1x128xf32>
    %149 = math.exp %148 : vector<1x128xf32>
    %cst_60 = arith.constant 1.000000e+00 : f32
    %150 = vector.broadcast %cst_60 : f32 to vector<1x128xf32>
    %151 = arith.addf %150, %149 : vector<1x128xf32>
    %152 = arith.divf %150, %151 : vector<1x128xf32>
    %153 = arith.mulf %146, %140 : vector<1x128xf32>
    %154 = arith.addf %137, %153 : vector<1x128xf32>
    %155 = math.tanh %154 : vector<1x128xf32>
    %156 = arith.subf %126, %155 : vector<1x128xf32>
    %157 = arith.mulf %152, %156 : vector<1x128xf32>
    %158 = arith.addf %155, %157 : vector<1x128xf32>
    %159 = arith.index_cast %c2_i32_52 : i32 to index
    %c0_61 = arith.constant 0 : index
    %160 = vector.load %arg8[%159, %c0_61] : memref<8x128xf32, #tpu.memory_space<vmem>>, vector<1x128xf32>
    tpu.vector_store %arg8[%159, %c0_61], %158 {strides = array<i32>} : memref<8x128xf32, #tpu.memory_space<vmem>>, vector<1x128xf32>,
    %c3_i32_62 = arith.constant 3 : i32
    %161 = arith.index_cast %c3_i32_62 : i32 to index
    %c0_63 = arith.constant 0 : index
    %162 = vector.load %arg10[%161, %c0_63] : memref<8x384xf32, #tpu.memory_space<vmem>>, vector<1x384xf32>
    %c0_64 = arith.constant 0 : index
    %c0_65 = arith.constant 0 : index
    %163 = vector.load %arg5[%c0_64, %c0_65] : memref<128x384xf32, #tpu.memory_space<vmem>>, vector<128x384xf32>
    %cst_66 = arith.constant dense<0.000000e+00> : vector<1x384xf32>
    %164 = tpu.matmul %158, %163, %cst_66 {dimension_numbers = #tpu.dot_dimension_numbers<[1], [0], [0], [1], [0, 0, 1, 1], [], []>} : vector<1x128xf32>, vector<128x384xf32>, vector<1x384xf32> -> vector<1x384xf32>
    %c0_67 = arith.constant 0 : index
    %c0_68 = arith.constant 0 : index
    %165 = vector.load %arg7[%c0_67, %c0_68] : memref<1x384xf32, #tpu.memory_space<vmem>>, vector<1x384xf32>
    %166 = arith.addf %164, %165 : vector<1x384xf32>
    %167 = vector.extract_strided_slice %162 {offsets = [0, 0], sizes = [1, 128], strides = [1, 1]} : vector<1x384xf32> to vector<1x128xf32>
    %168 = vector.extract_strided_slice %162 {offsets = [0, 128], sizes = [1, 128], strides = [1, 1]} : vector<1x384xf32> to vector<1x128xf32>
    %169 = vector.extract_strided_slice %162 {offsets = [0, 256], sizes = [1, 128], strides = [1, 1]} : vector<1x384xf32> to vector<1x128xf32>
    %170 = vector.extract_strided_slice %166 {offsets = [0, 0], sizes = [1, 128], strides = [1, 1]} : vector<1x384xf32> to vector<1x128xf32>
    %171 = vector.extract_strided_slice %166 {offsets = [0, 128], sizes = [1, 128], strides = [1, 1]} : vector<1x384xf32> to vector<1x128xf32>
    %172 = vector.extract_strided_slice %166 {offsets = [0, 256], sizes = [1, 128], strides = [1, 1]} : vector<1x384xf32> to vector<1x128xf32>
    %173 = arith.addf %167, %170 : vector<1x128xf32>
    %174 = arith.negf %173 : vector<1x128xf32>
    %175 = math.exp %174 : vector<1x128xf32>
    %cst_69 = arith.constant 1.000000e+00 : f32
    %176 = vector.broadcast %cst_69 : f32 to vector<1x128xf32>
    %177 = arith.addf %176, %175 : vector<1x128xf32>
    %178 = arith.divf %176, %177 : vector<1x128xf32>
    %179 = arith.addf %168, %171 : vector<1x128xf32>
    %180 = arith.negf %179 : vector<1x128xf32>
    %181 = math.exp %180 : vector<1x128xf32>
    %cst_70 = arith.constant 1.000000e+00 : f32
    %182 = vector.broadcast %cst_70 : f32 to vector<1x128xf32>
    %183 = arith.addf %182, %181 : vector<1x128xf32>
    %184 = arith.divf %182, %183 : vector<1x128xf32>
    %185 = arith.mulf %178, %172 : vector<1x128xf32>
    %186 = arith.addf %169, %185 : vector<1x128xf32>
    %187 = math.tanh %186 : vector<1x128xf32>
    %188 = arith.subf %158, %187 : vector<1x128xf32>
    %189 = arith.mulf %184, %188 : vector<1x128xf32>
    %190 = arith.addf %187, %189 : vector<1x128xf32>
    %191 = arith.index_cast %c3_i32_62 : i32 to index
    %c0_71 = arith.constant 0 : index
    %192 = vector.load %arg8[%191, %c0_71] : memref<8x128xf32, #tpu.memory_space<vmem>>, vector<1x128xf32>
    tpu.vector_store %arg8[%191, %c0_71], %190 {strides = array<i32>} : memref<8x128xf32, #tpu.memory_space<vmem>>, vector<1x128xf32>,
    %c4_i32_72 = arith.constant 4 : i32
    %193 = arith.index_cast %c4_i32_72 : i32 to index
    %c0_73 = arith.constant 0 : index
    %194 = vector.load %arg10[%193, %c0_73] : memref<8x384xf32, #tpu.memory_space<vmem>>, vector<1x384xf32>
    %c0_74 = arith.constant 0 : index
    %c0_75 = arith.constant 0 : index
    %195 = vector.load %arg5[%c0_74, %c0_75] : memref<128x384xf32, #tpu.memory_space<vmem>>, vector<128x384xf32>
    %cst_76 = arith.constant dense<0.000000e+00> : vector<1x384xf32>
    %196 = tpu.matmul %190, %195, %cst_76 {dimension_numbers = #tpu.dot_dimension_numbers<[1], [0], [0], [1], [0, 0, 1, 1], [], []>} : vector<1x128xf32>, vector<128x384xf32>, vector<1x384xf32> -> vector<1x384xf32>
    %c0_77 = arith.constant 0 : index
    %c0_78 = arith.constant 0 : index
    %197 = vector.load %arg7[%c0_77, %c0_78] : memref<1x384xf32, #tpu.memory_space<vmem>>, vector<1x384xf32>
    %198 = arith.addf %196, %197 : vector<1x384xf32>
    %199 = vector.extract_strided_slice %194 {offsets = [0, 0], sizes = [1, 128], strides = [1, 1]} : vector<1x384xf32> to vector<1x128xf32>
    %200 = vector.extract_strided_slice %194 {offsets = [0, 128], sizes = [1, 128], strides = [1, 1]} : vector<1x384xf32> to vector<1x128xf32>
    %201 = vector.extract_strided_slice %194 {offsets = [0, 256], sizes = [1, 128], strides = [1, 1]} : vector<1x384xf32> to vector<1x128xf32>
    %202 = vector.extract_strided_slice %198 {offsets = [0, 0], sizes = [1, 128], strides = [1, 1]} : vector<1x384xf32> to vector<1x128xf32>
    %203 = vector.extract_strided_slice %198 {offsets = [0, 128], sizes = [1, 128], strides = [1, 1]} : vector<1x384xf32> to vector<1x128xf32>
    %204 = vector.extract_strided_slice %198 {offsets = [0, 256], sizes = [1, 128], strides = [1, 1]} : vector<1x384xf32> to vector<1x128xf32>
    %205 = arith.addf %199, %202 : vector<1x128xf32>
    %206 = arith.negf %205 : vector<1x128xf32>
    %207 = math.exp %206 : vector<1x128xf32>
    %cst_79 = arith.constant 1.000000e+00 : f32
    %208 = vector.broadcast %cst_79 : f32 to vector<1x128xf32>
    %209 = arith.addf %208, %207 : vector<1x128xf32>
    %210 = arith.divf %208, %209 : vector<1x128xf32>
    %211 = arith.addf %200, %203 : vector<1x128xf32>
    %212 = arith.negf %211 : vector<1x128xf32>
    %213 = math.exp %212 : vector<1x128xf32>
    %cst_80 = arith.constant 1.000000e+00 : f32
    %214 = vector.broadcast %cst_80 : f32 to vector<1x128xf32>
    %215 = arith.addf %214, %213 : vector<1x128xf32>
    %216 = arith.divf %214, %215 : vector<1x128xf32>
    %217 = arith.mulf %210, %204 : vector<1x128xf32>
    %218 = arith.addf %201, %217 : vector<1x128xf32>
    %219 = math.tanh %218 : vector<1x128xf32>
    %220 = arith.subf %190, %219 : vector<1x128xf32>
    %221 = arith.mulf %216, %220 : vector<1x128xf32>
    %222 = arith.addf %219, %221 : vector<1x128xf32>
    %223 = arith.index_cast %c4_i32_72 : i32 to index
    %c0_81 = arith.constant 0 : index
    %224 = vector.load %arg8[%223, %c0_81] : memref<8x128xf32, #tpu.memory_space<vmem>>, vector<1x128xf32>
    tpu.vector_store %arg8[%223, %c0_81], %222 {strides = array<i32>} : memref<8x128xf32, #tpu.memory_space<vmem>>, vector<1x128xf32>,
    %c5_i32_82 = arith.constant 5 : i32
    %225 = arith.index_cast %c5_i32_82 : i32 to index
    %c0_83 = arith.constant 0 : index
    %226 = vector.load %arg10[%225, %c0_83] : memref<8x384xf32, #tpu.memory_space<vmem>>, vector<1x384xf32>
    %c0_84 = arith.constant 0 : index
    %c0_85 = arith.constant 0 : index
    %227 = vector.load %arg5[%c0_84, %c0_85] : memref<128x384xf32, #tpu.memory_space<vmem>>, vector<128x384xf32>
    %cst_86 = arith.constant dense<0.000000e+00> : vector<1x384xf32>
    %228 = tpu.matmul %222, %227, %cst_86 {dimension_numbers = #tpu.dot_dimension_numbers<[1], [0], [0], [1], [0, 0, 1, 1], [], []>} : vector<1x128xf32>, vector<128x384xf32>, vector<1x384xf32> -> vector<1x384xf32>
    %c0_87 = arith.constant 0 : index
    %c0_88 = arith.constant 0 : index
    %229 = vector.load %arg7[%c0_87, %c0_88] : memref<1x384xf32, #tpu.memory_space<vmem>>, vector<1x384xf32>
    %230 = arith.addf %228, %229 : vector<1x384xf32>
    %231 = vector.extract_strided_slice %226 {offsets = [0, 0], sizes = [1, 128], strides = [1, 1]} : vector<1x384xf32> to vector<1x128xf32>
    %232 = vector.extract_strided_slice %226 {offsets = [0, 128], sizes = [1, 128], strides = [1, 1]} : vector<1x384xf32> to vector<1x128xf32>
    %233 = vector.extract_strided_slice %226 {offsets = [0, 256], sizes = [1, 128], strides = [1, 1]} : vector<1x384xf32> to vector<1x128xf32>
    %234 = vector.extract_strided_slice %230 {offsets = [0, 0], sizes = [1, 128], strides = [1, 1]} : vector<1x384xf32> to vector<1x128xf32>
    %235 = vector.extract_strided_slice %230 {offsets = [0, 128], sizes = [1, 128], strides = [1, 1]} : vector<1x384xf32> to vector<1x128xf32>
    %236 = vector.extract_strided_slice %230 {offsets = [0, 256], sizes = [1, 128], strides = [1, 1]} : vector<1x384xf32> to vector<1x128xf32>
    %237 = arith.addf %231, %234 : vector<1x128xf32>
    %238 = arith.negf %237 : vector<1x128xf32>
    %239 = math.exp %238 : vector<1x128xf32>
    %cst_89 = arith.constant 1.000000e+00 : f32
    %240 = vector.broadcast %cst_89 : f32 to vector<1x128xf32>
    %241 = arith.addf %240, %239 : vector<1x128xf32>
    %242 = arith.divf %240, %241 : vector<1x128xf32>
    %243 = arith.addf %232, %235 : vector<1x128xf32>
    %244 = arith.negf %243 : vector<1x128xf32>
    %245 = math.exp %244 : vector<1x128xf32>
    %cst_90 = arith.constant 1.000000e+00 : f32
    %246 = vector.broadcast %cst_90 : f32 to vector<1x128xf32>
    %247 = arith.addf %246, %245 : vector<1x128xf32>
    %248 = arith.divf %246, %247 : vector<1x128xf32>
    %249 = arith.mulf %242, %236 : vector<1x128xf32>
    %250 = arith.addf %233, %249 : vector<1x128xf32>
    %251 = math.tanh %250 : vector<1x128xf32>
    %252 = arith.subf %222, %251 : vector<1x128xf32>
    %253 = arith.mulf %248, %252 : vector<1x128xf32>
    %254 = arith.addf %251, %253 : vector<1x128xf32>
    %255 = arith.index_cast %c5_i32_82 : i32 to index
    %c0_91 = arith.constant 0 : index
    %256 = vector.load %arg8[%255, %c0_91] : memref<8x128xf32, #tpu.memory_space<vmem>>, vector<1x128xf32>
    tpu.vector_store %arg8[%255, %c0_91], %254 {strides = array<i32>} : memref<8x128xf32, #tpu.memory_space<vmem>>, vector<1x128xf32>,
    %c6_i32_92 = arith.constant 6 : i32
    %257 = arith.index_cast %c6_i32_92 : i32 to index
    %c0_93 = arith.constant 0 : index
    %258 = vector.load %arg10[%257, %c0_93] : memref<8x384xf32, #tpu.memory_space<vmem>>, vector<1x384xf32>
    %c0_94 = arith.constant 0 : index
    %c0_95 = arith.constant 0 : index
    %259 = vector.load %arg5[%c0_94, %c0_95] : memref<128x384xf32, #tpu.memory_space<vmem>>, vector<128x384xf32>
    %cst_96 = arith.constant dense<0.000000e+00> : vector<1x384xf32>
    %260 = tpu.matmul %254, %259, %cst_96 {dimension_numbers = #tpu.dot_dimension_numbers<[1], [0], [0], [1], [0, 0, 1, 1], [], []>} : vector<1x128xf32>, vector<128x384xf32>, vector<1x384xf32> -> vector<1x384xf32>
    %c0_97 = arith.constant 0 : index
    %c0_98 = arith.constant 0 : index
    %261 = vector.load %arg7[%c0_97, %c0_98] : memref<1x384xf32, #tpu.memory_space<vmem>>, vector<1x384xf32>
    %262 = arith.addf %260, %261 : vector<1x384xf32>
    %263 = vector.extract_strided_slice %258 {offsets = [0, 0], sizes = [1, 128], strides = [1, 1]} : vector<1x384xf32> to vector<1x128xf32>
    %264 = vector.extract_strided_slice %258 {offsets = [0, 128], sizes = [1, 128], strides = [1, 1]} : vector<1x384xf32> to vector<1x128xf32>
    %265 = vector.extract_strided_slice %258 {offsets = [0, 256], sizes = [1, 128], strides = [1, 1]} : vector<1x384xf32> to vector<1x128xf32>
    %266 = vector.extract_strided_slice %262 {offsets = [0, 0], sizes = [1, 128], strides = [1, 1]} : vector<1x384xf32> to vector<1x128xf32>
    %267 = vector.extract_strided_slice %262 {offsets = [0, 128], sizes = [1, 128], strides = [1, 1]} : vector<1x384xf32> to vector<1x128xf32>
    %268 = vector.extract_strided_slice %262 {offsets = [0, 256], sizes = [1, 128], strides = [1, 1]} : vector<1x384xf32> to vector<1x128xf32>
    %269 = arith.addf %263, %266 : vector<1x128xf32>
    %270 = arith.negf %269 : vector<1x128xf32>
    %271 = math.exp %270 : vector<1x128xf32>
    %cst_99 = arith.constant 1.000000e+00 : f32
    %272 = vector.broadcast %cst_99 : f32 to vector<1x128xf32>
    %273 = arith.addf %272, %271 : vector<1x128xf32>
    %274 = arith.divf %272, %273 : vector<1x128xf32>
    %275 = arith.addf %264, %267 : vector<1x128xf32>
    %276 = arith.negf %275 : vector<1x128xf32>
    %277 = math.exp %276 : vector<1x128xf32>
    %cst_100 = arith.constant 1.000000e+00 : f32
    %278 = vector.broadcast %cst_100 : f32 to vector<1x128xf32>
    %279 = arith.addf %278, %277 : vector<1x128xf32>
    %280 = arith.divf %278, %279 : vector<1x128xf32>
    %281 = arith.mulf %274, %268 : vector<1x128xf32>
    %282 = arith.addf %265, %281 : vector<1x128xf32>
    %283 = math.tanh %282 : vector<1x128xf32>
    %284 = arith.subf %254, %283 : vector<1x128xf32>
    %285 = arith.mulf %280, %284 : vector<1x128xf32>
    %286 = arith.addf %283, %285 : vector<1x128xf32>
    %287 = arith.index_cast %c6_i32_92 : i32 to index
    %c0_101 = arith.constant 0 : index
    %288 = vector.load %arg8[%287, %c0_101] : memref<8x128xf32, #tpu.memory_space<vmem>>, vector<1x128xf32>
    tpu.vector_store %arg8[%287, %c0_101], %286 {strides = array<i32>} : memref<8x128xf32, #tpu.memory_space<vmem>>, vector<1x128xf32>,
    %c7_i32_102 = arith.constant 7 : i32
    %289 = arith.index_cast %c7_i32_102 : i32 to index
    %c0_103 = arith.constant 0 : index
    %290 = vector.load %arg10[%289, %c0_103] : memref<8x384xf32, #tpu.memory_space<vmem>>, vector<1x384xf32>
    %c0_104 = arith.constant 0 : index
    %c0_105 = arith.constant 0 : index
    %291 = vector.load %arg5[%c0_104, %c0_105] : memref<128x384xf32, #tpu.memory_space<vmem>>, vector<128x384xf32>
    %cst_106 = arith.constant dense<0.000000e+00> : vector<1x384xf32>
    %292 = tpu.matmul %286, %291, %cst_106 {dimension_numbers = #tpu.dot_dimension_numbers<[1], [0], [0], [1], [0, 0, 1, 1], [], []>} : vector<1x128xf32>, vector<128x384xf32>, vector<1x384xf32> -> vector<1x384xf32>
    %c0_107 = arith.constant 0 : index
    %c0_108 = arith.constant 0 : index
    %293 = vector.load %arg7[%c0_107, %c0_108] : memref<1x384xf32, #tpu.memory_space<vmem>>, vector<1x384xf32>
    %294 = arith.addf %292, %293 : vector<1x384xf32>
    %295 = vector.extract_strided_slice %290 {offsets = [0, 0], sizes = [1, 128], strides = [1, 1]} : vector<1x384xf32> to vector<1x128xf32>
    %296 = vector.extract_strided_slice %290 {offsets = [0, 128], sizes = [1, 128], strides = [1, 1]} : vector<1x384xf32> to vector<1x128xf32>
    %297 = vector.extract_strided_slice %290 {offsets = [0, 256], sizes = [1, 128], strides = [1, 1]} : vector<1x384xf32> to vector<1x128xf32>
    %298 = vector.extract_strided_slice %294 {offsets = [0, 0], sizes = [1, 128], strides = [1, 1]} : vector<1x384xf32> to vector<1x128xf32>
    %299 = vector.extract_strided_slice %294 {offsets = [0, 128], sizes = [1, 128], strides = [1, 1]} : vector<1x384xf32> to vector<1x128xf32>
    %300 = vector.extract_strided_slice %294 {offsets = [0, 256], sizes = [1, 128], strides = [1, 1]} : vector<1x384xf32> to vector<1x128xf32>
    %301 = arith.addf %295, %298 : vector<1x128xf32>
    %302 = arith.negf %301 : vector<1x128xf32>
    %303 = math.exp %302 : vector<1x128xf32>
    %cst_109 = arith.constant 1.000000e+00 : f32
    %304 = vector.broadcast %cst_109 : f32 to vector<1x128xf32>
    %305 = arith.addf %304, %303 : vector<1x128xf32>
    %306 = arith.divf %304, %305 : vector<1x128xf32>
    %307 = arith.addf %296, %299 : vector<1x128xf32>
    %308 = arith.negf %307 : vector<1x128xf32>
    %309 = math.exp %308 : vector<1x128xf32>
    %cst_110 = arith.constant 1.000000e+00 : f32
    %310 = vector.broadcast %cst_110 : f32 to vector<1x128xf32>
    %311 = arith.addf %310, %309 : vector<1x128xf32>
    %312 = arith.divf %310, %311 : vector<1x128xf32>
    %313 = arith.mulf %306, %300 : vector<1x128xf32>
    %314 = arith.addf %297, %313 : vector<1x128xf32>
    %315 = math.tanh %314 : vector<1x128xf32>
    %316 = arith.subf %286, %315 : vector<1x128xf32>
    %317 = arith.mulf %312, %316 : vector<1x128xf32>
    %318 = arith.addf %315, %317 : vector<1x128xf32>
    %319 = arith.index_cast %c7_i32_102 : i32 to index
    %c0_111 = arith.constant 0 : index
    %320 = vector.load %arg8[%319, %c0_111] : memref<8x128xf32, #tpu.memory_space<vmem>>, vector<1x128xf32>
    tpu.vector_store %arg8[%319, %c0_111], %318 {strides = array<i32>} : memref<8x128xf32, #tpu.memory_space<vmem>>, vector<1x128xf32>,
    %c8_i32_112 = arith.constant 8 : i32
    return
  }
  func.func @transform_0(%arg0: i32, %arg1: memref<16xi32, #tpu.memory_space<smem>>) -> (i32, i32) {
    %c0_i32 = arith.constant 0 : i32
    %c0_i32_0 = arith.constant 0 : i32
    %c0_i32_1 = arith.constant 0 : i32
    return %c0_i32, %c0_i32_0 : i32, i32
  }
  func.func @transform_1(%arg0: i32, %arg1: memref<16xi32, #tpu.memory_space<smem>>) -> (i32, i32) {
    %c0_i32 = arith.constant 0 : i32
    %c0_i32_0 = arith.constant 0 : i32
    %c0_i32_1 = arith.constant 0 : i32
    return %c0_i32, %c0_i32_0 : i32, i32
  }
  func.func @transform_2(%arg0: i32, %arg1: memref<16xi32, #tpu.memory_space<smem>>) -> (i32, i32) {
    %c0_i32 = arith.constant 0 : i32
    %c0_i32_0 = arith.constant 0 : i32
    %c0_i32_1 = arith.constant 0 : i32
    return %c0_i32, %c0_i32_0 : i32, i32
  }
  func.func @transform_3(%arg0: i32, %arg1: memref<16xi32, #tpu.memory_space<smem>>) -> (i32, i32) {
    %c0_i32 = arith.constant 0 : i32
    %c0_i32_0 = arith.constant 0 : i32
    %c0_i32_1 = arith.constant 0 : i32
    return %c0_i32, %c0_i32_0 : i32, i32
  }
  func.func @transform_4(%arg0: i32, %arg1: memref<16xi32, #tpu.memory_space<smem>>) -> (i32, i32) {
    %c0_i32 = arith.constant 0 : i32
    %c0_i32_0 = arith.constant 0 : i32
    %c0_i32_1 = arith.constant 0 : i32
    return %c0_i32, %c0_i32_0 : i32, i32
  }
  func.func @transform_5(%arg0: i32, %arg1: memref<16xi32, #tpu.memory_space<smem>>) -> (i32, i32) {
    %c0_i32 = arith.constant 0 : i32
    %c0_i32_0 = arith.constant 0 : i32
    %c0_i32_1 = arith.constant 0 : i32
    return %c0_i32, %c0_i32_0 : i32, i32
  }
  func.func @transform_6(%arg0: i32, %arg1: memref<16xi32, #tpu.memory_space<smem>>) -> (i32, i32) {
    %c0_i32 = arith.constant 0 : i32
    %c0_i32_0 = arith.constant 0 : i32
    return %arg0, %c0_i32 : i32, i32
  }
}

</mosaic_0001>

<bundles_post_ra>
// kernel: encoder_rnn_forward_batched.1
= control target key start
LH: loop header
LB: loop body
LE: loop exit
PB: predicated region body
PF: predicated region fallthrough
CT: control target
= control target key end

     0   :  { %s2165_s27 = smov [#allocation5]   ;;  %s2995_s0 = inlined_call_operand.vmem [shape: s32[16], index: 0, kind: input, shape index: {}]   ;;  %s2996_s1 = inlined_call_operand.hbm [shape: f32[16,128], index: 1, kind: input, shape index: {}]   ;;  %s2997_s2 = inlined_call_operand.vmem [shape: f32[2,128], index: 2, kind: input, shape index: {}]   ;;  %s2998_s3 = inlined_call_operand.hbm [shape: f32[128,384], index: 3, kind: input, shape index: {}]   ;;  %s2999_s4 = inlined_call_operand.hbm [shape: f32[128,384], index: 4, kind: input, shape index: {}]   ;;  %s3000_s5 = inlined_call_operand.vmem [shape: f32[1,384], index: 5, kind: input, shape index: {}]   ;;  %s3001_s6 = inlined_call_operand.vmem [shape: f32[1,384], index: 6, kind: input, shape index: {}]   ;;  %s3002_s7 = inlined_call_operand.vmem [shape: f32[16,128], index: 7, kind: output, shape index: {}]  }
   0x1   :  { %s13_s26 = sshll.u32 %s2995_s0, 4  ;;  %s14_s26 = int_to_ptr.vmem [resolvable:$true] %s13_s26 }
   0x2   :  { %16 = dma.vmem_to_smem %s14_s26, 16, %s2165_s27, [#allocation4] }
   0x3   :  { %2151 = dma.done.wait [#allocation4], 16 }
   0x4   :  { %2152 = vsyncadd [#allocation4], 4294967280 }
   0x5   :  { %19 = sfence }
   0x6   :  { %20 = vsyncpa [#allocation7], 0 }
   0x7   :  { %21 = vsyncpa [#allocation9], 0  ;;  %s2216_s28 = smov 0  }
   0x8 LB: > { %s212_s0 = sshll.u32 %s2998_s3, 4  ;;  %s2225_s8 = sadd.s32 4294967295, %s2163_s28   ;;  %s2163_s28 = sphi %s2216_s28, %s27_s28   ;;  %s213_s0 = int_to_ptr.hbm [resolvable:$true] %s212_s0 }
   0x9   : > { %p1893_p0 = scmp.ge.s32.totalorder %s2163_s28, 1  ;;  %p184_p1 = scmp.lt.s32.totalorder %s2163_s28, 3 }
   0xa   : > { %p1943_p2 = scmp.eq.s32.totalorder %s2225_s8, 0  ;;  %s2166_s10 = smov [#allocation8]  }
   0xb   : > { %p2230_p3 = pnand %p1893_p0, %p184_p1  ;;  %s214_s11 = sshll.u32 %s2166_s10, 4  ;;  %s215_s11 = int_to_ptr.vmem [resolvable:$true] %s214_s11 }
   0xc   : > { %s195_s14 = sshll.u32 %s2996_s1, 4  ;;  %s2167_s16 = smov [#allocation6]   ;;  %s196_s14 = int_to_ptr.hbm [resolvable:$true] %s195_s14 }
   0xd   : > { %p1933_p4 = pneg %p2230_p3  ;;  %s197_s17 = sshll.u32 %s2167_s16, 4  ;;  %s198_s17 = int_to_ptr.vmem [resolvable:$true] %s197_s17 }
   0xe   : > { %s2168_s18 = smov 384   ;;  %s2169_s19 = smov 24  }
   0xf   : > { %p2241_p5 = pnand %p1943_p2, %p1933_p4  ;;  %s226_s22 = sshll.u32 %s2999_s4, 4  ;;  %s227_s22 = int_to_ptr.hbm [resolvable:$true] %s226_s22 }
  0x10   : > { %s2170_s23 = smov 128   ;;  %s2171_s24 = smov 8  }
  0x11   : > { %1939 = dma.hbm_to_vmem [thread:$0]  (!%p2241_p5), %s213_s0, 6144, %s215_s11, [#allocation9], %s2168_s18, %s2168_s18, %s2169_s19  }
  0x12   : > { %1936 = dma.hbm_to_vmem [thread:$0]  (!%p2241_p5), %s196_s14, 256, %s198_s17, [#allocation7], %s2170_s23, %s2170_s23, %s2171_s24  }
  0x13   : > { %s2172_s25 = smov [#allocation10]   ;;  %250 = sbr.rel (%p2230_p3) target bundleno = 1497 (0x5d9), region = 44 }
  0x14   : > { %s228_s26 = sshll.u32 %s2172_s25, 4  ;;  %s229_s26 = int_to_ptr.vmem [resolvable:$true] %s228_s26 }
  0x15   : > { %1942 = dma.hbm_to_vmem [thread:$0]  (!%p2241_p5), %s227_s22, 6144, %s229_s26, [#allocation9], %s2168_s18, %s2168_s18, %s2169_s19  }
  0x18   : > { %2154 = dma.done.wait (%p1943_p2), [#allocation7], 256  }
  0x19   : > { %2156 = vsyncadd (%p1943_p2), [#allocation7], 4294967040 }
  0x1a   : > { %2158 = dma.done.wait (%p1943_p2), [#allocation9], 12288  }
  0x1b   : > { %2160 = vsyncadd (%p1943_p2), [#allocation9], 4294955008  ;;  %s2265_s27 = sshll.u32 %s2225_s8, 3  ;;  %v375_v0 = vld [vmem:[#allocation8 + $0x168] sm:$0xff]  ;;  %v377_v1 = vld [vmem:[#allocation8 + $0x178] sm:$0xff]  ;;  %p285_p6 = scmp.lt.s32.totalorder %s2225_s8, 1 }
  0x1c   : > { %v372_v2 = vld [vmem:[#allocation8 + $0x150] sm:$0xff]  ;;  %386 = vmatpush.msra.mxu0 %v375_v0  ;;  %426 = vmatpush.msra.mxu2 %v377_v1  ;;  %v374_v3 = vld [vmem:[#allocation8 + $0x160] sm:$0xff]  ;;  %s294_s29 = sadd.s32 1, %s2265_s27  ;;  %v369_v4 = vld [vmem:[#allocation8 + $0x138] sm:$0xff]  ;;  %s299_s30 = sadd.s32 2, %s2265_s27 }
  0x1d   : > { %v371_v5 = vld [vmem:[#allocation8 + $0x148] sm:$0xff]  ;;  %v376_v6 = vld [vmem:[#allocation8 + $0x170] sm:$0xff]  ;;  %v373_v7 = vld [vmem:[#allocation8 + $0x158] sm:$0xff]  ;;  %s2270_s0 = sld [smem:[#allocation5 + %s2265_s27]]  ;;  %s304_s9 = sadd.s32 3, %s2265_s27 }
  0x1e   : > { %387 = vmatpush.msra.mxu0 %v372_v2  ;;  %427 = vmatpush.msra.mxu2 %v374_v3  ;;  %v366_v8 = vld [vmem:[#allocation8 + $0x120] sm:$0xff]  ;;  %v368_v9 = vld [vmem:[#allocation8 + $0x130] sm:$0xff]  ;;  %v2273_v10 = vld [vmem:[#allocation10 + $0x168] sm:$0xff]  ;;  %s2275_s10 = sld [smem:[#allocation5 + %s294_s29]]  ;;  %s309_s11 = sadd.s32 4, %s2265_s27 }
  0x1f   : > { %406 = vmatpush.msra.mxu1 %v376_v6  ;;  %v370_v11 = vld [vmem:[#allocation8 + $0x140] sm:$0xff]  ;;  %v2278_v12 = vld [vmem:[#allocation10 + $0x150] sm:$0xff]  ;;  %s2280_s12 = sld [smem:[#allocation5 + %s299_s30]]  ;;  %s314_s13 = sadd.s32 5, %s2265_s27  ;;  %v363_v13 = vld [vmem:[#allocation8 + $0x108] sm:$0xff]  ;;  %508 = vmatpush.msra.mxu3 %v2273_v10 }
  0x20   : > { %388 = vmatpush.msra.mxu0 %v369_v4  ;;  %428 = vmatpush.msra.mxu2 %v371_v5  ;;  %v365_v14 = vld [vmem:[#allocation8 + $0x118] sm:$0xff]  ;;  %s2284_s14 = sld [smem:[#allocation5 + %s304_s9]]  ;;  %s319_s15 = sadd.s32 6, %s2265_s27  ;;  %v367_v15 = vld [vmem:[#allocation8 + $0x128] sm:$0xff]  ;;  %v360_v17 = vld [vmem:[#allocation8 + $0xf0] sm:$0xff] }
  0x21   : > { %407 = vmatpush.msra.mxu1 %v373_v7  ;;  %v2287_v16 = vld [vmem:[#allocation10 + $0x138] sm:$0xff]  ;;  %s2289_s16 = sld [smem:[#allocation5 + %s309_s11]]  ;;  %s324_s17 = sadd.s32 7, %s2265_s27  ;;  %v362_v18 = vld [vmem:[#allocation8 + $0x100] sm:$0xff]  ;;  %509 = vmatpush.msra.mxu3 %v2278_v12  ;;  %v364_v19 = vld [vmem:[#allocation8 + $0x110] sm:$0xff] }
  0x22   : > { %389 = vmatpush.msra.mxu0 %v366_v8  ;;  %429 = vmatpush.msra.mxu2 %v368_v9  ;;  %s2293_s18 = sld [smem:[#allocation5 + %s314_s13]]  ;;  %v2295_v20 = vld [vmem:[#allocation10 + $0x120] sm:$0xff]  ;;  %v357_v21 = vld [vmem:[#allocation8 + $0xd8] sm:$0xff]  ;;  %v359_v22 = vld [vmem:[#allocation8 + $0xe8] sm:$0xff]  ;;  %s449_s9 = scalar_lea.vmem %s2997_s2, %s2225_s8 }
  0x23   : > { %408 = vmatpush.msra.mxu1 %v370_v11  ;;  %s2297_s19 = sld [smem:[#allocation5 + %s319_s15]]  ;;  %510 = vmatpush.msra.mxu3 %v2287_v16  ;;  %v361_v23 = vld [vmem:[#allocation8 + $0xf8] sm:$0xff]  ;;  %v2302_v24 = vld [vmem:[#allocation10 + $0x108] sm:$0xff]  ;;  %v354_v25 = vld [vmem:[#allocation8 + $0xc0] sm:$0xff]  ;;  %s291_s21 = scalar_lea.vmem [#allocation6], %s2270_s0 }
  0x24   : > { %390 = vmatpush.msra.mxu0 %v363_v13  ;;  %430 = vmatpush.msra.mxu2 %v365_v14  ;;  %s2300_s20 = sld [smem:[#allocation5 + %s324_s17]]  ;;  %v356_v26 = vld [vmem:[#allocation8 + $0xd0] sm:$0xff]  ;;  %v358_v27 = vld [vmem:[#allocation8 + $0xe0] sm:$0xff]  ;;  %v351_v29 = vld [vmem:[#allocation8 + $0xa8] sm:$0xff]  ;;  %s296_s22 = scalar_lea.vmem [#allocation6], %s2275_s10 }
  0x25   : > { %409 = vmatpush.msra.mxu1 %v367_v15  ;;  %511 = vmatpush.msra.mxu3 %v2295_v20  ;;  %v2305_v28 = vld [vmem:[#allocation10 + $0xf0] sm:$0xff]  ;;  %v353_v30 = vld [vmem:[#allocation8 + $0xb8] sm:$0xff]  ;;  %v355_v31 = vld [vmem:[#allocation8 + $0xc8] sm:$0xff]  ;;  %s301_s23 = scalar_lea.vmem [#allocation6], %s2280_s12  ;;  %s3006_s8 = smov (!%p285_p6, %s2225_s8), 1 }
  0x26   : > { %391 = vmatpush.msra.mxu0 %v360_v17  ;;  %431 = vmatpush.msra.mxu2 %v362_v18  ;;  %v2308_v32 = vld [vmem:[#allocation10 + $0xd8] sm:$0xff]  ;;  %v348_v33 = vld [vmem:[#allocation8 + $0x90] sm:$0xff]  ;;  %v350_v34 = vld [vmem:[#allocation8 + $0xa0] sm:$0xff]  ;;  %s306_s24 = scalar_lea.vmem [#allocation6], %s2284_s14  ;;  %s1901_s14 = sshll.u32 %s3006_s8, 3 }
  0x27   : > { %410 = vmatpush.msra.mxu1 %v364_v19  ;;  %512 = vmatpush.msra.mxu3 %v2302_v24  ;;  %v345_v35 = vld [vmem:[#allocation8 + $0x78] sm:$0xff]  ;;  %v352_v36 = vld [vmem:[#allocation8 + $0xb0] sm:$0xff]  ;;  %v2311_v37 = vld [vmem:[#allocation10 + $0xc0] sm:$0xff]  ;;  %s311_s25 = scalar_lea.vmem [#allocation6], %s2289_s16  ;;  %s2576_s17 = scalar_lea.vmem %s3002_s7, %s1901_s14 }
  0x28   : > { %392 = vmatpush.msra.mxu0 %v357_v21  ;;  %432 = vmatpush.msra.mxu2 %v359_v22  ;;  %v347_v38 = vld [vmem:[#allocation8 + $0x88] sm:$0xff]  ;;  %v349_v39 = vld [vmem:[#allocation8 + $0x98] sm:$0xff]  ;;  %v292_v41 = vld [vmem:[%s291_s21] sm:$0x1]  ;;  %s316_s26 = scalar_lea.vmem [#allocation6], %s2293_s18 }
  0x29   : > { %411 = vmatpush.msra.mxu1 %v361_v23  ;;  %513 = vmatpush.msra.mxu3 %v2305_v28  ;;  %v2314_v40 = vld [vmem:[#allocation10 + $0xa8] sm:$0xff]  ;;  %v297_v42 = vld [vmem:[%s296_s22] sm:$0x1]  ;;  %v342_v44 = vld [vmem:[#allocation8 + $0x60] sm:$0xff]  ;;  %293 = vst [vmem:[#allocation2] sm:$0x1] %v292_v41 }
  0x2a   : > { %393 = vmatpush.msra.mxu0 %v354_v25  ;;  %433 = vmatpush.msra.mxu2 %v356_v26  ;;  %v302_v43 = vld [vmem:[%s301_s23] sm:$0x1]  ;;  %v346_v47 = vld [vmem:[#allocation8 + $0x80] sm:$0xff]  ;;  %298 = vst [vmem:[#allocation2 + $0x1] sm:$0x1] %v297_v42  ;;  %v339_v50 = vld [vmem:[#allocation8 + $0x48] sm:$0xff] }
  0x2b   : > { %412 = vmatpush.msra.mxu1 %v358_v27  ;;  %514 = vmatpush.msra.mxu3 %v2308_v32  ;;  %v344_v45 = vld [vmem:[#allocation8 + $0x70] sm:$0xff]  ;;  %v341_v51 = vld [vmem:[#allocation8 + $0x58] sm:$0xff]  ;;  %303 = vst [vmem:[#allocation2 + $0x2] sm:$0x1] %v302_v43  ;;  %v343_v53 = vld [vmem:[#allocation8 + $0x68] sm:$0xff]  ;;  %s321_s27 = scalar_lea.vmem [#allocation6], %s2297_s19 }
  0x2c   : > { %394 = vmatpush.msra.mxu0 %v351_v29  ;;  %434 = vmatpush.msra.mxu2 %v353_v30  ;;  %v307_v46 = vld [vmem:[%s306_s24] sm:$0x1]  ;;  %v2326_v54 = vld [vmem:[#allocation10 + $0x78] sm:$0xff]  ;;  %v338_v57 = vld [vmem:[#allocation8 + $0x40] sm:$0xff]  ;;  %s326_s29 = scalar_lea.vmem [#allocation6], %s2300_s20 }
  0x2d   : > { %413 = vmatpush.msra.mxu1 %v355_v31  ;;  %515 = vmatpush.msra.mxu3 %v2311_v37  ;;  %v2321_v48 = vld [vmem:[#allocation10 + $0x90] sm:$0xff]  ;;  %308 = vst [vmem:[#allocation2 + $0x3] sm:$0x1] %v307_v46  ;;  %v2331_v60 = vld [vmem:[#allocation10 + $0x60] sm:$0xff]  ;;  %v333_v61 = vld [vmem:[#allocation8 + $0x18] sm:$0xff] }
  0x2e   : > { %395 = vmatpush.msra.mxu0 %v348_v33  ;;  %435 = vmatpush.msra.mxu2 %v350_v34  ;;  %v312_v49 = vld [vmem:[%s311_s25] sm:$0x1]  ;;  %v335_v62 = vld [vmem:[#allocation8 + $0x28] sm:$0xff]  ;;  %v337_v63 = vld [vmem:[#allocation8 + $0x38] sm:$0xff] }
  0x2f   : > { %414 = vmatpush.msra.mxu1 %v352_v36  ;;  %516 = vmatpush.msra.mxu3 %v2314_v40  ;;  %v317_v52 = vld [vmem:[%s316_s26] sm:$0x1]  ;;  %313 = vst [vmem:[#allocation2 + $0x4] sm:$0x1] %v312_v49  ;;  %v2334_v0 = vld [vmem:[#allocation10 + $0x48] sm:$0xff]  ;;  %v330_v1 = vld [vmem:[#allocation8] sm:$0xff] }
  0x30   : > { %396 = vmatpush.msra.mxu0 %v345_v35  ;;  %436 = vmatpush.msra.mxu2 %v347_v38  ;;  %v322_v55 = vld [vmem:[%s321_s27] sm:$0x1]  ;;  %318 = vst [vmem:[#allocation2 + $0x5] sm:$0x1] %v317_v52  ;;  %v334_v4 = vld [vmem:[#allocation8 + $0x20] sm:$0xff]  ;;  %v2342_v6 = vld [vmem:[#allocation10 + $0x158] sm:$0xff] }
  0x31   : > { %415 = vmatpush.msra.mxu1 %v349_v39  ;;  %v336_v56 = vld [vmem:[#allocation8 + $0x30] sm:$0xff]  ;;  %517 = vmatpush.msra.mxu3 %v2321_v48  ;;  %323 = vst [vmem:[#allocation2 + $0x6] sm:$0x1] %v322_v55  ;;  %v331_v7 = vld [vmem:[#allocation8 + $0x8] sm:$0xff]  ;;  %v2345_v8 = vld [vmem:[#allocation10 + $0x18] sm:$0xff] }
  0x32   : > { %397 = vmatpush.msra.mxu0 %v342_v44  ;;  %437 = vmatpush.msra.mxu2 %v344_v45  ;;  %v327_v58 = vld [vmem:[%s326_s29] sm:$0x1]  ;;  %v2352_v9 = vld [vmem:[#allocation10 + $0x140] sm:$0xff]  ;;  %v2359_v14 = vld [vmem:[#allocation10 + $0x128] sm:$0xff] }
  0x33   : > { %416 = vmatpush.msra.mxu1 %v346_v47  ;;  %v340_v59 = vld [vmem:[#allocation8 + $0x50] sm:$0xff]  ;;  %518 = vmatpush.msra.mxu3 %v2326_v54  ;;  %328 = vst [vmem:[#allocation2 + $0x7] sm:$0x1] %v327_v58  ;;  %v2356_v13 = vld [vmem:[#allocation10] sm:$0xff]  ;;  %v2364_v17 = vld [vmem:[#allocation10 + $0x178] sm:$0xff] }
  0x34   : > { %398 = vmatpush.msra.mxu0 %v339_v50  ;;  %438 = vmatpush.msra.mxu2 %v341_v51  ;;  %v332_v2 = vld [vmem:[#allocation8 + $0x10] sm:$0xff]  ;;  %v2371_v19 = vld [vmem:[#allocation10 + $0x160] sm:$0xff]  ;;  %v2373_v21 = vld [vmem:[#allocation10 + $0xf8] sm:$0xff] }
  0x35   : > { %417 = vmatpush.msra.mxu1 %v343_v53  ;;  %519 = vmatpush.msra.mxu3 %v2331_v60  ;;  %v2337_v3 = vld [vmem:[#allocation10 + $0x170] sm:$0xff]  ;;  %v2378_v22 = vld [vmem:[#allocation10 + $0x148] sm:$0xff]  ;;  %v2381_v23 = vld [vmem:[#allocation10 + $0xe0] sm:$0xff] }
  0x36   : > { %399 = vmatpush.msra.mxu0 %v336_v56  ;;  %439 = vmatpush.msra.mxu2 %v338_v57  ;;  %v2340_v5 = vld [vmem:[#allocation10 + $0x30] sm:$0xff]  ;;  %v2389_v26 = vld [vmem:[#allocation10 + $0xc8] sm:$0xff]  ;;  %v2394_v27 = vld [vmem:[#allocation10 + $0x118] sm:$0xff] }
  0x37   : > { %418 = vmatpush.msra.mxu1 %v340_v59  ;;  %520 = vmatpush.msra.mxu3 %v2334_v0  ;;  %v2361_v15 = vld [vmem:[%s449_s9] sm:$0x1]  ;;  %v2402_v30 = vld [vmem:[#allocation10 + $0x100] sm:$0xff]  ;;  %v2405_v31 = vld [vmem:[#allocation10 + $0x98] sm:$0xff] }
  0x38   : > { %400 = vmatpush.msra.mxu0 %v333_v61  ;;  %440 = vmatpush.msra.mxu2 %v335_v62  ;;  %v2367_v18 = vld [vmem:[#allocation10 + $0x110] sm:$0xff]  ;;  %v2410_v33 = vld [vmem:[#allocation10 + $0xe8] sm:$0xff]  ;;  %v2413_v34 = vld [vmem:[#allocation10 + $0x80] sm:$0xff] }
  0x39   : > { %419 = vmatpush.msra.mxu1 %v337_v63  ;;  %521 = vmatpush.msra.mxu3 %v2340_v5  ;;  %v2386_v25 = vld [vmem:[#allocation10 + $0x130] sm:$0xff]  ;;  %v2421_v36 = vld [vmem:[#allocation10 + $0x68] sm:$0xff]  ;;  %v2426_v38 = vld [vmem:[#allocation10 + $0xb8] sm:$0xff] }
  0x3a   : > { %401 = vmatpush.msra.mxu0 %v330_v1  ;;  %441 = vmatpush.msra.mxu2 %v332_v2  ;;  %v329_v11 = vld [vmem:[#allocation2] sm:$0xff]  ;;  %v2434_v41 = vld [vmem:[#allocation10 + $0xa0] sm:$0xff]  ;;  %v2437_v42 = vld [vmem:[#allocation10 + $0x38] sm:$0xff] }
  0x3b   : > { %420 = vmatpush.msra.mxu1 %v334_v4  ;;  %442 = vmatmul.f32.vlgmr.msra.gmra.mxu2 %v329_v11  ;;  %v2397_v29 = vld [vmem:[#allocation10 + $0xb0] sm:$0xff]  ;;  %v2442_v43 = vld [vmem:[#allocation10 + $0x88] sm:$0xff]  ;;  %v2445_v44 = vld [vmem:[#allocation10 + $0x20] sm:$0xff] }
  0x3c   : > { %528 = vmatpush.msrb.mxu0 %v2337_v3  ;;  %678 = vmatpush.msrb.mxu2 %v2273_v10  ;;  %v2418_v35 = vld [vmem:[#allocation10 + $0xd0] sm:$0xff]  ;;  %v2453_v46 = vld [vmem:[#allocation10 + $0x8] sm:$0xff]  ;;  %v2458_v47 = vld [vmem:[#allocation10 + $0x58] sm:$0xff] }
  0x3d   : > { %421 = vmatpush.msra.mxu1 %v331_v7  ;;  %522 = vmatpush.msra.mxu3 %v2345_v8  ;;  %v2429_v39 = vld [vmem:[#allocation10 + $0x50] sm:$0xff]  ;;  %v2464_v49 = vld [vmem:[#allocation10 + $0x40] sm:$0xff]  ;;  %v2469_v50 = vld [vmem:[#allocation10 + $0x28] sm:$0xff] }
  0x3e   : > { %529 = vmatpush.msrb.mxu0 %v2342_v6  ;;  %422 = vmatmul.f32.vlgmr.msra.gmra.mxu1 %v329_v11  ;;  %v2450_v45 = vld [vmem:[#allocation10 + $0x70] sm:$0xff] }
  0x3f   : > { %402 = vmatmul.f32.vlgmr.msra.gmra.mxu0 %v329_v11  ;;  %523 = vmatpush.msra.mxu3 %v2356_v13  ;;  %v2475_v51 = vld [vmem:[#allocation10 + $0x10] sm:$0xff] }
  0x40   : > { %530 = vmatpush.msrb.mxu0 %v2352_v9  ;;  %524 = vmatmul.f32.vlgmr.msra.gmra.mxu3 %v2361_v15 }
  0x41   : > { %548 = vmatpush.msrb.mxu1 %v2364_v17  ;;  %698 = vmatpush.msrb.mxu3 %v2337_v3 }
  0x42   : > { %531 = vmatpush.msrb.mxu0 %v2359_v14  ;;  %679 = vmatpush.msrb.mxu2 %v2278_v12 }
  0x43   : > { %549 = vmatpush.msrb.mxu1 %v2371_v19  ;;  %699 = vmatpush.msrb.mxu3 %v2342_v6 }
  0x44   : > { %532 = vmatpush.msrb.mxu0 %v2367_v18  ;;  %680 = vmatpush.msrb.mxu2 %v2287_v16 }
  0x45   : > { %550 = vmatpush.msrb.mxu1 %v2378_v22  ;;  %700 = vmatpush.msrb.mxu3 %v2352_v9 }
  0x46   : > { %533 = vmatpush.msrb.mxu0 %v2373_v21  ;;  %681 = vmatpush.msrb.mxu2 %v2295_v20 }
  0x47   : > { %551 = vmatpush.msrb.mxu1 %v2386_v25  ;;  %701 = vmatpush.msrb.mxu3 %v2359_v14 }
  0x48   : > { %534 = vmatpush.msrb.mxu0 %v2381_v23  ;;  %682 = vmatpush.msrb.mxu2 %v2302_v24 }
  0x49   : > { %552 = vmatpush.msrb.mxu1 %v2394_v27  ;;  %702 = vmatpush.msrb.mxu3 %v2367_v18 }
  0x4a   : > { %535 = vmatpush.msrb.mxu0 %v2389_v26  ;;  %683 = vmatpush.msrb.mxu2 %v2305_v28 }
  0x4b   : > { %553 = vmatpush.msrb.mxu1 %v2402_v30  ;;  %703 = vmatpush.msrb.mxu3 %v2373_v21 }
  0x4c   : > { %536 = vmatpush.msrb.mxu0 %v2397_v29  ;;  %684 = vmatpush.msrb.mxu2 %v2308_v32 }
  0x4d   : > { %554 = vmatpush.msrb.mxu1 %v2410_v33  ;;  %704 = vmatpush.msrb.mxu3 %v2381_v23 }
  0x4e   : > { %537 = vmatpush.msrb.mxu0 %v2405_v31  ;;  %685 = vmatpush.msrb.mxu2 %v2311_v37 }
  0x4f   : > { %555 = vmatpush.msrb.mxu1 %v2418_v35  ;;  %705 = vmatpush.msrb.mxu3 %v2389_v26 }
  0x50   : > { %538 = vmatpush.msrb.mxu0 %v2413_v34  ;;  %686 = vmatpush.msrb.mxu2 %v2314_v40 }
  0x51   : > { %556 = vmatpush.msrb.mxu1 %v2426_v38  ;;  %706 = vmatpush.msrb.mxu3 %v2397_v29 }
  0x52   : > { %539 = vmatpush.msrb.mxu0 %v2421_v36  ;;  %687 = vmatpush.msrb.mxu2 %v2321_v48 }
  0x53   : > { %557 = vmatpush.msrb.mxu1 %v2434_v41  ;;  %707 = vmatpush.msrb.mxu3 %v2405_v31 }
  0x54   : > { %540 = vmatpush.msrb.mxu0 %v2429_v39  ;;  %688 = vmatpush.msrb.mxu2 %v2326_v54 }
  0x55   : > { %558 = vmatpush.msrb.mxu1 %v2442_v43  ;;  %708 = vmatpush.msrb.mxu3 %v2413_v34 }
  0x56   : > { %541 = vmatpush.msrb.mxu0 %v2437_v42  ;;  %689 = vmatpush.msrb.mxu2 %v2331_v60 }
  0x57   : > { %559 = vmatpush.msrb.mxu1 %v2450_v45  ;;  %709 = vmatpush.msrb.mxu3 %v2421_v36 }
  0x58   : > { %542 = vmatpush.msrb.mxu0 %v2445_v44  ;;  %690 = vmatpush.msrb.mxu2 %v2334_v0 }
  0x59   : > { %560 = vmatpush.msrb.mxu1 %v2458_v47  ;;  %710 = vmatpush.msrb.mxu3 %v2429_v39 }
  0x5a   : > { %543 = vmatpush.msrb.mxu0 %v2453_v46  ;;  %691 = vmatpush.msrb.mxu2 %v2340_v5 }
  0x5b   : > { %544 = vmatmul.f32.vlgmr.msrb.gmra.mxu0 %v2361_v15  ;;  %561 = vmatpush.msrb.mxu1 %v2464_v49 }
  0x5c   : > { %718 = vmatpush.msra.mxu0 %v2364_v17  ;;  %711 = vmatpush.msrb.mxu3 %v2437_v42 }
  0x5d   : > { %562 = vmatpush.msrb.mxu1 %v2469_v50  ;;  %692 = vmatpush.msrb.mxu2 %v2345_v8 }
  0x5e   : > { %719 = vmatpush.msra.mxu0 %v2371_v19  ;;  %712 = vmatpush.msrb.mxu3 %v2445_v44 }
  0x5f   : > { %563 = vmatpush.msrb.mxu1 %v2475_v51  ;;  %693 = vmatpush.msrb.mxu2 %v2356_v13 }
  0x60   : > { %720 = vmatpush.msra.mxu0 %v2378_v22  ;;  %564 = vmatmul.f32.vlgmr.msrb.gmra.mxu1 %v2361_v15 }
  0x61   : > { %713 = vmatpush.msrb.mxu3 %v2453_v46  ;;  %848 = vmatpush.msra.mxu1 %v2273_v10  ;;  %v378_v10 = vld [vmem:[%s3000_s5] sm:$0x7] }
  0x62   : > { %721 = vmatpush.msra.mxu0 %v2386_v25  ;;  %868 = vmatpush.msra.mxu2 %v2337_v3 }
  0x63   : > { %888 = vmatpush.msra.mxu3 %v2364_v17  ;;  %849 = vmatpush.msra.mxu1 %v2278_v12  ;;  %v381_v12 = vperm.slane %v378_v10, 1 }
  0x64   : > { %722 = vmatpush.msra.mxu0 %v2394_v27  ;;  %869 = vmatpush.msra.mxu2 %v2342_v6 }
  0x65   : > { %889 = vmatpush.msra.mxu3 %v2371_v19  ;;  %850 = vmatpush.msra.mxu1 %v2287_v16  ;;  %v380_v16 = vperm.slane %v378_v10, 0 }
  0x66   : > { %723 = vmatpush.msra.mxu0 %v2402_v30  ;;  %870 = vmatpush.msra.mxu2 %v2352_v9 }
  0x67   : > { %890 = vmatpush.msra.mxu3 %v2378_v22  ;;  %851 = vmatpush.msra.mxu1 %v2295_v20 }
  0x68   : > { %724 = vmatpush.msra.mxu0 %v2410_v33  ;;  %871 = vmatpush.msra.mxu2 %v2359_v14 }
  0x69   : > { %891 = vmatpush.msra.mxu3 %v2386_v25  ;;  %852 = vmatpush.msra.mxu1 %v2302_v24 }
  0x6a   : > { %725 = vmatpush.msra.mxu0 %v2418_v35  ;;  %872 = vmatpush.msra.mxu2 %v2367_v18 }
  0x6b   : > { %892 = vmatpush.msra.mxu3 %v2394_v27  ;;  %853 = vmatpush.msra.mxu1 %v2305_v28 }
  0x6c   : > { %726 = vmatpush.msra.mxu0 %v2426_v38  ;;  %873 = vmatpush.msra.mxu2 %v2373_v21 }
  0x6d   : > { %893 = vmatpush.msra.mxu3 %v2402_v30  ;;  %854 = vmatpush.msra.mxu1 %v2308_v32 }
  0x6e   : > { %727 = vmatpush.msra.mxu0 %v2434_v41  ;;  %874 = vmatpush.msra.mxu2 %v2381_v23 }
  0x6f   : > { %894 = vmatpush.msra.mxu3 %v2410_v33  ;;  %855 = vmatpush.msra.mxu1 %v2311_v37  ;;  %v382_v37 = vperm.slane %v378_v10, 2 }
  0x70   : > { %728 = vmatpush.msra.mxu0 %v2442_v43  ;;  %875 = vmatpush.msra.mxu2 %v2389_v26 }
  0x71   : > { %895 = vmatpush.msra.mxu3 %v2418_v35  ;;  %856 = vmatpush.msra.mxu1 %v2314_v40 }
  0x72   : > { %729 = vmatpush.msra.mxu0 %v2450_v45  ;;  %876 = vmatpush.msra.mxu2 %v2397_v29 }
  0x73   : > { %896 = vmatpush.msra.mxu3 %v2426_v38  ;;  %857 = vmatpush.msra.mxu1 %v2321_v48  ;;  %v500_v48 = vld [vmem:[%s3001_s6] sm:$0x7] }
  0x74   : > { %730 = vmatpush.msra.mxu0 %v2458_v47  ;;  %877 = vmatpush.msra.mxu2 %v2405_v31  ;;  %v502_v53 = vperm.slane %v500_v48, 0  ;;  %v503_v59 = vperm.slane %v500_v48, 1 }
  0x75   : > { %897 = vmatpush.msra.mxu3 %v2434_v41  ;;  %858 = vmatpush.msra.mxu1 %v2326_v54 }
  0x76   : > { %731 = vmatpush.msra.mxu0 %v2464_v49  ;;  %878 = vmatpush.msra.mxu2 %v2413_v34 }
  0x77   : > { %898 = vmatpush.msra.mxu3 %v2442_v43  ;;  %859 = vmatpush.msra.mxu1 %v2331_v60 }
  0x78   : > { %732 = vmatpush.msra.mxu0 %v2469_v50  ;;  %879 = vmatpush.msra.mxu2 %v2421_v36 }
  0x79   : > { %899 = vmatpush.msra.mxu3 %v2450_v45  ;;  %860 = vmatpush.msra.mxu1 %v2334_v0 }
  0x7a   : > { %733 = vmatpush.msra.mxu0 %v2475_v51  ;;  %880 = vmatpush.msra.mxu2 %v2429_v39 }
  0x7b   : > { %900 = vmatpush.msra.mxu3 %v2458_v47  ;;  %861 = vmatpush.msra.mxu1 %v2340_v5  ;;  %v504_v5 = vperm.slane %v500_v48, 2 }
  0x7c   : > { %881 = vmatpush.msra.mxu2 %v2437_v42 }
  0x7d   : > { %901 = vmatpush.msra.mxu3 %v2464_v49  ;;  %862 = vmatpush.msra.mxu1 %v2345_v8 }
  0x7e   : > { %882 = vmatpush.msra.mxu2 %v2445_v44 }
  0x7f   : > { %902 = vmatpush.msra.mxu3 %v2469_v50  ;;  %863 = vmatpush.msra.mxu1 %v2356_v13 }
  0x80   : > { %883 = vmatpush.msra.mxu2 %v2453_v46 }
  0x81   : > { %1038 = vmatpush.msrb.mxu1 %v2337_v3  ;;  %903 = vmatpush.msra.mxu3 %v2475_v51 }
  0x83   : > { %1039 = vmatpush.msrb.mxu1 %v2342_v6 }
  0x85   : > { %1040 = vmatpush.msrb.mxu1 %v2352_v9 }
  0x87   : > { %1041 = vmatpush.msrb.mxu1 %v2359_v14 }
  0x89   : > { %1042 = vmatpush.msrb.mxu1 %v2367_v18 }
  0x8b   : > { %1043 = vmatpush.msrb.mxu1 %v2373_v21 }
  0x8d   : > { %1044 = vmatpush.msrb.mxu1 %v2381_v23 }
  0x8f   : > { %1045 = vmatpush.msrb.mxu1 %v2389_v26 }
  0x91   : > { %1046 = vmatpush.msrb.mxu1 %v2397_v29 }
  0x93   : > { %1047 = vmatpush.msrb.mxu1 %v2405_v31 }
  0x95   : > { %1048 = vmatpush.msrb.mxu1 %v2413_v34 }
  0x97   : > { %1049 = vmatpush.msrb.mxu1 %v2421_v36 }
  0x99   : > { %1050 = vmatpush.msrb.mxu1 %v2429_v39 }
  0x9b   : > { %1051 = vmatpush.msrb.mxu1 %v2437_v42 }
  0x9d   : > { %1052 = vmatpush.msrb.mxu1 %v2445_v44 }
  0x9f   : > { %1053 = vmatpush.msrb.mxu1 %v2453_v46 }
  0xbb   : > { %v423_v20 = vpop.f32.mrf.mxu1 }
  0xbc   : > { %v403_v24 = vpop.f32.mrf.mxu0  ;;  %v424_v28 = vadd.f32 %v423_v20, %v381_v12 }
  0xbd   : > { %v404_v32 = vadd.f32 %v403_v24, %v380_v16 }
  0xbe   : > { %447 = vst [vmem:[#allocation3 + $0x8] sm:$0xff] %v424_v28  ;;  %v443_v40 = vpop.f32.mrf.mxu2 }
  0xbf   : > { %446 = vst [vmem:[#allocation3] sm:$0xff] %v404_v32  ;;  %v444_v52 = vadd.f32 %v443_v40, %v382_v37 }
  0xc1   : > { %448 = vst [vmem:[#allocation3 + $0x10] sm:$0xff] %v444_v52 }
  0xc3   : > { %v525_v54 = vpop.f32.mrf.mxu3 }
  0xc4   : > { %v526_v55 = vadd.f32 %v525_v54, %v502_v53 }
  0xc8   : > { %v451_v56 = vld [vmem:[#allocation3] ss:$8 sm:$0x7] }
  0xc9   : > { %v568_v57 = vadd.f32 %v526_v55, %v451_v56  ;;  %v589_v0 = vrot.slane %v451_v56, 1  ;;  %v612_v34 = vrot.slane %v451_v56, 2 }
  0xcb   : > { %v1903_v58 = vmul.f32 -1.442695, %v568_v57 }
  0xcd   : > { %1965 = vpow2.f32 %v1903_v58 }
  0xd3   : > { %v1966_v60 = vpop.eup %1965 }
  0xd4   : > { %v572_v61 = vadd.f32 1.0, %v1966_v60 }
  0xd6   : > { %1967 = vrcp.f32 %v572_v61  ;;  %v584_v8 = vand.u32 2147483648, %v572_v61  ;;  %v582_v13 = vand.u32 2147483647, %v572_v61  ;;  %vm578_vm1 = vweird.f32 %v572_v61 }
  0xd8   : > { %v545_v62 = vpop.f32.mrf.mxu0  ;;  %v585_v23 = vor.u32 1.1754944e-38, %v584_v8  ;;  %vm583_vm3 = vcmp.eq.f32.partialorder %v582_v13, 8.507059e+37 }
  0xd9   : > { %v546_v63 = vadd.f32 %v545_v62, %v503_v59 }
  0xdb   : > { %v591_v1 = vadd.f32 %v589_v0, %v546_v63 }
  0xdc   : > { %v1968_v3 = vpop.eup %1967 }
  0xdd   : > { %v1904_v2 = vmul.f32 -1.442695, %v591_v1  ;;  %v574_v4 = vmul.f32 %v1968_v3, %v572_v61  ;;  %v565_v7 = vpop.f32.mrf.mxu1  ;;  %vm579_vm0 = vweird.f32 %v1968_v3 }
  0xde   : > { %v566_v18 = vadd.f32 %v565_v7, %v504_v5  ;;  %vm580_vm2 = vmor %vm578_vm1, %vm579_vm0 }
  0xdf   : > { %1969 = vpow2.f32 %v1904_v2  ;;  %v575_v6 = vsub.f32 1.0, %v574_v4 }
  0xe1   : > { %v576_v11 = vmul.f32 %v1968_v3, %v575_v6 }
  0xe3   : > { %v577_v21 = vadd.f32 %v1968_v3, %v576_v11 }
  0xe5   : > { %v1970_v9 = vpop.eup %1969  ;;  %v581_v26 = vsel %vm580_vm2, %v1968_v3, %v577_v21 }
  0xe6   : > { %v595_v14 = vadd.f32 1.0, %v1970_v9  ;;  %v586_v29 = vsel %vm583_vm3, %v585_v23, %v581_v26 }
  0xe7   : > { %v611_v31 = vmul.f32 %v586_v29, %v566_v18 }
  0xe8   : > { %1971 = vrcp.f32 %v595_v14  ;;  %v607_v46 = vand.u32 2147483648, %v595_v14  ;;  %v605_v12 = vand.u32 2147483647, %v595_v14  ;;  %vm601_vm5 = vweird.f32 %v595_v14 }
  0xe9   : > { %v614_v36 = vadd.f32 %v612_v34, %v611_v31  ;;  %v2612_v31 = vld [vmem:[#allocation10 + $0x168] sm:$0xff]  ;;  %v2616_v34 = vld [vmem:[#allocation10 + $0x150] sm:$0xff] }
  0xea   : > { %v608_v24 = vor.u32 1.1754944e-38, %v607_v46  ;;  %vm606_vm7 = vcmp.eq.f32.partialorder %v605_v12, 8.507059e+37  ;;  %1018 = vmatpush.msrb.mxu0 %v2612_v31  ;;  %v2637_v46 = vld [vmem:[#allocation10 + $0x108] sm:$0xff] }
  0xeb   : > { %1973 = vtanh.f32 %v614_v36  ;;  %v2621_v36 = vld [vmem:[#allocation10 + $0x138] sm:$0xff] }
  0xec   : > { %1019 = vmatpush.msrb.mxu0 %v2616_v34 }
  0xee   : > { %v1972_v39 = vpop.eup %1971  ;;  %1020 = vmatpush.msrb.mxu0 %v2621_v36 }
  0xef   : > { %v597_v42 = vmul.f32 %v1972_v39, %v595_v14  ;;  %vm602_vm4 = vweird.f32 %v1972_v39 }
  0xf0   : > { %vm603_vm6 = vmor %vm601_vm5, %vm602_vm4 }
  0xf1   : > { %v598_v44 = vsub.f32 1.0, %v597_v42  ;;  %v1974_v16 = vpop.eup %1973  ;;  %v2631_v42 = vld [vmem:[#allocation10 + $0x120] sm:$0xff] }
  0xf2   : > { %v616_v28 = vsub.f32 %v2361_v15, %v1974_v16  ;;  %v670_v15 = vld [vmem:[%s3001_s6] sm:$0x7]  ;;  %1021 = vmatpush.msrb.mxu0 %v2631_v42 }
  0xf3   : > { %v599_v10 = vmul.f32 %v1972_v39, %v598_v44  ;;  %v674_v58 = vperm.slane %v670_v15, 2 }
  0xf4   : > { %1022 = vmatpush.msrb.mxu0 %v2637_v46 }
  0xf5   : > { %v600_v20 = vadd.f32 %v1972_v39, %v599_v10  ;;  %v2642_v10 = vld [vmem:[#allocation10 + $0xf0] sm:$0xff] }
  0xf6   : > { %1023 = vmatpush.msrb.mxu0 %v2642_v10 }
  0xf7   : > { %v604_v32 = vsel %vm603_vm6, %v1972_v39, %v600_v20  ;;  %v2627_v39 = vld [vmem:[%s3001_s6] sm:$0x7]  ;;  %v2647_v20 = vld [vmem:[#allocation10 + $0xd8] sm:$0xff] }
  0xf8   : > { %v609_v37 = vsel %vm606_vm7, %v608_v24, %v604_v32  ;;  %v842_v44 = vperm.slane %v2627_v39, 0  ;;  %v2650_v24 = vld [vmem:[#allocation3 + $0x2] ss:$8 sm:$0x7]  ;;  %1024 = vmatpush.msrb.mxu0 %v2647_v20  ;;  %v843_v32 = vperm.slane %v2627_v39, 1 }
  0xf9   : > { %v617_v40 = vmul.f32 %v616_v28, %v609_v37  ;;  %v2656_v37 = vld [vmem:[#allocation10 + $0xc0] sm:$0xff] }
  0xfa   : > { %1025 = vmatpush.msrb.mxu0 %v2656_v37 }
  0xfb   : > { %v2578_v48 = vadd.f32 %v1974_v16, %v617_v40 }
  0xfd   : > { %619 = vst [vmem:[%s2576_s17] sm:$0x1] %v2578_v48  ;;  %694 = vmatmul.f32.vlgmr.msrb.gmra.mxu2 %v2578_v48  ;;  %714 = vmatmul.f32.vlgmr.msrb.gmra.mxu3 %v2578_v48 }
  0xfe   : > { %734 = vmatmul.f32.vlgmr.msra.gmra.mxu0 %v2578_v48  ;;  %1058 = vmatpush.msrb.mxu2 %v2364_v17  ;;  %v672_v17 = vperm.slane %v670_v15, 0 }
  0xff   : > { %1188 = vmatpush.msrb.mxu3 %v2612_v31 }
 0x100   : > { %1059 = vmatpush.msrb.mxu2 %v2371_v19  ;;  %v673_v19 = vperm.slane %v670_v15, 1 }
 0x101   : > { %1189 = vmatpush.msrb.mxu3 %v2616_v34 }
 0x102   : > { %1060 = vmatpush.msrb.mxu2 %v2378_v22  ;;  %v621_v22 = vld [vmem:[#allocation3 + $0x1] ss:$8 sm:$0x7] }
 0x103   : > { %v782_v5 = vrot.slane %v621_v22, 2  ;;  %1190 = vmatpush.msrb.mxu3 %v2621_v36 }
 0x104   : > { %1061 = vmatpush.msrb.mxu2 %v2386_v25 }
 0x105   : > { %1191 = vmatpush.msrb.mxu3 %v2631_v42 }
 0x106   : > { %1062 = vmatpush.msrb.mxu2 %v2394_v27 }
 0x107   : > { %1192 = vmatpush.msrb.mxu3 %v2637_v46 }
 0x108   : > { %1063 = vmatpush.msrb.mxu2 %v2402_v30 }
 0x109   : > { %1193 = vmatpush.msrb.mxu3 %v2642_v10 }
 0x10a   : > { %1064 = vmatpush.msrb.mxu2 %v2410_v33 }
 0x10b   : > { %1194 = vmatpush.msrb.mxu3 %v2647_v20 }
 0x10c   : > { %1065 = vmatpush.msrb.mxu2 %v2418_v35  ;;  %v759_v35 = vrot.slane %v621_v22, 1 }
 0x10d   : > { %1195 = vmatpush.msrb.mxu3 %v2656_v37 }
 0x10e   : > { %1066 = vmatpush.msrb.mxu2 %v2426_v38 }
 0x110   : > { %1067 = vmatpush.msrb.mxu2 %v2434_v41 }
 0x112   : > { %1068 = vmatpush.msrb.mxu2 %v2442_v43 }
 0x114   : > { %1069 = vmatpush.msrb.mxu2 %v2450_v45 }
 0x116   : > { %1070 = vmatpush.msrb.mxu2 %v2458_v47 }
 0x118   : > { %1071 = vmatpush.msrb.mxu2 %v2464_v49 }
 0x11a   : > { %1072 = vmatpush.msrb.mxu2 %v2469_v50 }
 0x11c   : > { %1073 = vmatpush.msrb.mxu2 %v2475_v51 }
 0x17b   : > { %v735_v61 = vpop.f32.mrf.mxu0 }
 0x17c   : > { %v736_v1 = vadd.f32 %v735_v61, %v674_v58 }
 0x180   : > { %v695_v25 = vpop.f32.mrf.mxu2  ;;  %v715_v27 = vpop.f32.mrf.mxu3 }
 0x181   : > { %v696_v30 = vadd.f32 %v695_v25, %v672_v17  ;;  %v716_v33 = vadd.f32 %v715_v27, %v673_v19  ;;  %v929_v19 = vrot.slane %v2650_v24, 1  ;;  %v2672_v27 = vld [vmem:[#allocation10 + $0x78] sm:$0xff] }
 0x183   : > { %v738_v38 = vadd.f32 %v696_v30, %v621_v22  ;;  %v761_v41 = vadd.f32 %v759_v35, %v716_v33  ;;  %v2667_v22 = vld [vmem:[#allocation10 + $0x90] sm:$0xff]  ;;  %v2677_v33 = vld [vmem:[#allocation10 + $0x60] sm:$0xff]  ;;  %v2681_v35 = vld [vmem:[#allocation10 + $0x48] sm:$0xff] }
 0x185   : > { %v1905_v43 = vmul.f32 -1.442695, %v738_v38  ;;  %v1906_v45 = vmul.f32 -1.442695, %v761_v41  ;;  %v2684_v41 = vld [vmem:[#allocation10 + $0x30] sm:$0xff] }
 0x187   : > { %1975 = vpow2.f32 %v1905_v43 }
 0x188   : > { %1977 = vpow2.f32 %v1906_v45  ;;  %v2689_v45 = vld [vmem:[#allocation10 + $0x18] sm:$0xff] }
 0x18d   : > { %v1976_v47 = vpop.eup %1975 }
 0x18e   : > { %v1978_v49 = vpop.eup %1977  ;;  %v742_v50 = vadd.f32 1.0, %v1976_v47  ;;  %v2694_v47 = vld [vmem:[#allocation10] sm:$0xff] }
 0x18f   : > { %v765_v51 = vadd.f32 1.0, %v1978_v49 }
 0x190   : > { %1979 = vrcp.f32 %v742_v50  ;;  %v754_v56 = vand.u32 2147483648, %v742_v50  ;;  %v752_v60 = vand.u32 2147483647, %v742_v50  ;;  %vm748_vm9 = vweird.f32 %v742_v50 }
 0x191   : > { %1981 = vrcp.f32 %v765_v51  ;;  %v777_v9 = vand.u32 2147483648, %v765_v51  ;;  %vm771_vm13 = vweird.f32 %v765_v51  ;;  %v775_v11 = vand.u32 2147483647, %v765_v51 }
 0x192   : > { %v755_v63 = vor.u32 1.1754944e-38, %v754_v56  ;;  %vm753_vm11 = vcmp.eq.f32.partialorder %v752_v60, 8.507059e+37 }
 0x193   : > { %v778_v18 = vor.u32 1.1754944e-38, %v777_v9  ;;  %vm776_vm15 = vcmp.eq.f32.partialorder %v775_v11, 8.507059e+37 }
 0x196   : > { %v1980_v52 = vpop.eup %1979 }
 0x197   : > { %v1982_v53 = vpop.eup %1981  ;;  %v744_v54 = vmul.f32 %v1980_v52, %v742_v50  ;;  %vm749_vm8 = vweird.f32 %v1980_v52 }
 0x198   : > { %v767_v57 = vmul.f32 %v1982_v53, %v765_v51  ;;  %vm750_vm10 = vmor %vm748_vm9, %vm749_vm8  ;;  %vm772_vm12 = vweird.f32 %v1982_v53 }
 0x199   : > { %v745_v55 = vsub.f32 1.0, %v744_v54  ;;  %vm773_vm14 = vmor %vm771_vm13, %vm772_vm12 }
 0x19a   : > { %v768_v0 = vsub.f32 1.0, %v767_v57 }
 0x19b   : > { %v746_v59 = vmul.f32 %v1980_v52, %v745_v55  ;;  %v844_v55 = vperm.slane %v2627_v39, 2  ;;  %v2713_v39 = vld [vmem:[#allocation10 + $0x170] sm:$0xff] }
 0x19c   : > { %v769_v6 = vmul.f32 %v1982_v53, %v768_v0 }
 0x19d   : > { %v747_v62 = vadd.f32 %v1980_v52, %v746_v59 }
 0x19e   : > { %v770_v8 = vadd.f32 %v1982_v53, %v769_v6 }
 0x19f   : > { %v751_v2 = vsel %vm750_vm10, %v1980_v52, %v747_v62 }
 0x1a0   : > { %v756_v3 = vsel %vm753_vm11, %v755_v63, %v751_v2  ;;  %v774_v13 = vsel %vm773_vm14, %v1982_v53, %v770_v8 }
 0x1a1   : > { %v781_v4 = vmul.f32 %v756_v3, %v736_v1  ;;  %v779_v23 = vsel %vm776_vm15, %v778_v18, %v774_v13 }
 0x1a3   : > { %v784_v7 = vadd.f32 %v782_v5, %v781_v4  ;;  %v952_v4 = vrot.slane %v2650_v24, 2 }
 0x1a5   : > { %1983 = vtanh.f32 %v784_v7 }
 0x1ab   : > { %v1984_v14 = vpop.eup %1983 }
 0x1ac   : > { %v786_v21 = vsub.f32 %v2578_v48, %v1984_v14  ;;  %v2661_v48 = vld [vmem:[#allocation10 + $0xa8] sm:$0xff] }
 0x1ad   : > { %1026 = vmatpush.msrb.mxu0 %v2661_v48  ;;  %1196 = vmatpush.msrb.mxu3 %v2661_v48 }
 0x1ae   : > { %v787_v26 = vmul.f32 %v786_v21, %v779_v23 }
 0x1af   : > { %1027 = vmatpush.msrb.mxu0 %v2667_v22  ;;  %1197 = vmatpush.msrb.mxu3 %v2667_v22 }
 0x1b0   : > { %v2605_v29 = vadd.f32 %v1984_v14, %v787_v26 }
 0x1b1   : > { %1028 = vmatpush.msrb.mxu0 %v2672_v27  ;;  %1198 = vmatpush.msrb.mxu3 %v2672_v27 }
 0x1b2   : > { %789 = vst [vmem:[%s2576_s17 + $0x1] sm:$0x1] %v2605_v29  ;;  %864 = vmatmul.f32.vlgmr.msra.gmra.mxu1 %v2605_v29  ;;  %884 = vmatmul.f32.vlgmr.msra.gmra.mxu2 %v2605_v29 }
 0x1b3   : > { %904 = vmatmul.f32.vlgmr.msra.gmra.mxu3 %v2605_v29  ;;  %1358 = vmatpush.msra.mxu2 %v2612_v31 }
 0x1b4   : > { %1029 = vmatpush.msrb.mxu0 %v2677_v33  ;;  %1199 = vmatpush.msrb.mxu3 %v2677_v33 }
 0x1b5   : > { %1359 = vmatpush.msra.mxu2 %v2616_v34 }
 0x1b6   : > { %1030 = vmatpush.msrb.mxu0 %v2681_v35  ;;  %1200 = vmatpush.msrb.mxu3 %v2681_v35 }
 0x1b7   : > { %1360 = vmatpush.msra.mxu2 %v2621_v36 }
 0x1b8   : > { %1031 = vmatpush.msrb.mxu0 %v2684_v41  ;;  %1201 = vmatpush.msrb.mxu3 %v2684_v41 }
 0x1b9   : > { %1361 = vmatpush.msra.mxu2 %v2631_v42 }
 0x1ba   : > { %1032 = vmatpush.msrb.mxu0 %v2689_v45  ;;  %1202 = vmatpush.msrb.mxu3 %v2689_v45 }
 0x1bb   : > { %1362 = vmatpush.msra.mxu2 %v2637_v46 }
 0x1bc   : > { %1033 = vmatpush.msrb.mxu0 %v2694_v47  ;;  %1203 = vmatpush.msrb.mxu3 %v2694_v47 }
 0x1bd   : > { %1363 = vmatpush.msra.mxu2 %v2642_v10 }
 0x1be   : > { %1208 = vmatpush.msra.mxu0 %v2713_v39  ;;  %1378 = vmatpush.msra.mxu3 %v2713_v39 }
 0x1bf   : > { %1364 = vmatpush.msra.mxu2 %v2647_v20 }
 0x1c1   : > { %1365 = vmatpush.msra.mxu2 %v2656_v37 }
 0x1c3   : > { %1366 = vmatpush.msra.mxu2 %v2661_v48 }
 0x1c5   : > { %1367 = vmatpush.msra.mxu2 %v2667_v22 }
 0x1c7   : > { %1368 = vmatpush.msra.mxu2 %v2672_v27 }
 0x1c9   : > { %1369 = vmatpush.msra.mxu2 %v2677_v33 }
 0x1cb   : > { %1370 = vmatpush.msra.mxu2 %v2681_v35 }
 0x1cd   : > { %1371 = vmatpush.msra.mxu2 %v2684_v41 }
 0x1cf   : > { %1372 = vmatpush.msra.mxu2 %v2689_v45 }
 0x1d1   : > { %1373 = vmatpush.msra.mxu2 %v2694_v47 }
 0x22f   : > { %v865_v12 = vpop.f32.mrf.mxu1 }
 0x230   : > { %v866_v16 = vadd.f32 %v865_v12, %v842_v44  ;;  %v2715_v44 = vld [vmem:[#allocation10 + $0x178] sm:$0xff]  ;;  %v2721_v12 = vld [vmem:[#allocation10 + $0x160] sm:$0xff] }
 0x231   : > { %1228 = vmatpush.msra.mxu1 %v2715_v44 }
 0x232   : > { %v908_v28 = vadd.f32 %v866_v16, %v2650_v24  ;;  %v2727_v16 = vld [vmem:[#allocation10 + $0x140] sm:$0xff]  ;;  %v2729_v24 = vld [vmem:[#allocation10 + $0x148] sm:$0xff] }
 0x233   : > { %1229 = vmatpush.msra.mxu1 %v2721_v12 }
 0x234   : > { %v1907_v40 = vmul.f32 -1.442695, %v908_v28  ;;  %v2736_v28 = vld [vmem:[%s3001_s6] sm:$0x7] }
 0x235   : > { %v885_v15 = vpop.f32.mrf.mxu2  ;;  %1230 = vmatpush.msra.mxu1 %v2729_v24 }
 0x236   : > { %1985 = vpow2.f32 %v1907_v40  ;;  %v886_v17 = vadd.f32 %v885_v15, %v843_v32  ;;  %v905_v59 = vpop.f32.mrf.mxu3  ;;  %v2740_v32 = vld [vmem:[#allocation10 + $0x128] sm:$0xff]  ;;  %v2742_v40 = vld [vmem:[#allocation10 + $0x130] sm:$0xff]  ;;  %v1012_v15 = vperm.slane %v2736_v28, 0 }
 0x237   : > { %v906_v0 = vadd.f32 %v905_v59, %v844_v55  ;;  %1231 = vmatpush.msra.mxu1 %v2742_v40  ;;  %v2771_v55 = vld [vmem:[#allocation10 + $0xe8] sm:$0xff]  ;;  %v2780_v59 = vld [vmem:[#allocation10 + $0xd0] sm:$0xff] }
 0x238   : > { %v931_v25 = vadd.f32 %v929_v19, %v886_v17  ;;  %v1013_v17 = vperm.slane %v2736_v28, 1  ;;  %v2750_v19 = vld [vmem:[#allocation10 + $0x110] sm:$0xff] }
 0x23a   : > { %v1908_v30 = vmul.f32 -1.442695, %v931_v25  ;;  %v2752_v25 = vld [vmem:[#allocation10 + $0x118] sm:$0xff] }
 0x23b   : > { %1232 = vmatpush.msra.mxu1 %v2752_v25 }
 0x23c   : > { %v1986_v38 = vpop.eup %1985  ;;  %1987 = vpow2.f32 %v1908_v30  ;;  %v2756_v30 = vld [vmem:[#allocation3 + $0x3] ss:$8 sm:$0x7] }
 0x23d   : > { %v912_v43 = vadd.f32 1.0, %v1986_v38  ;;  %v2760_v38 = vld [vmem:[#allocation10 + $0xf8] sm:$0xff] }
 0x23f   : > { %1989 = vrcp.f32 %v912_v43  ;;  %v924_v54 = vand.u32 2147483648, %v912_v43  ;;  %v922_v57 = vand.u32 2147483647, %v912_v43  ;;  %vm918_vm1 = vweird.f32 %v912_v43 }
 0x241   : > { %v925_v62 = vor.u32 1.1754944e-38, %v924_v54  ;;  %vm923_vm3 = vcmp.eq.f32.partialorder %v922_v57, 8.507059e+37  ;;  %v2769_v54 = vld [vmem:[#allocation10 + $0xe0] sm:$0xff] }
 0x242   : > { %v1988_v49 = vpop.eup %1987 }
 0x243   : > { %v935_v50 = vadd.f32 1.0, %v1988_v49 }
 0x245   : > { %v1990_v51 = vpop.eup %1989  ;;  %1991 = vrcp.f32 %v935_v50  ;;  %v947_v8 = vand.u32 2147483648, %v935_v50  ;;  %vm941_vm5 = vweird.f32 %v935_v50  ;;  %v945_v9 = vand.u32 2147483647, %v935_v50 }
 0x246   : > { %v914_v52 = vmul.f32 %v1990_v51, %v912_v43  ;;  %vm919_vm0 = vweird.f32 %v1990_v51  ;;  %v2762_v43 = vld [vmem:[#allocation10 + $0x100] sm:$0xff] }
 0x247   : > { %vm920_vm2 = vmor %vm918_vm1, %vm919_vm0  ;;  %v948_v14 = vor.u32 1.1754944e-38, %v947_v8  ;;  %vm946_vm7 = vcmp.eq.f32.partialorder %v945_v9, 8.507059e+37  ;;  %1233 = vmatpush.msra.mxu1 %v2762_v43  ;;  %v2822_v9 = vld [vmem:[#allocation10 + $0x38] sm:$0xff] }
 0x248   : > { %v915_v53 = vsub.f32 1.0, %v914_v52 }
 0x249   : > { %1234 = vmatpush.msra.mxu1 %v2771_v55 }
 0x24a   : > { %v916_v56 = vmul.f32 %v1990_v51, %v915_v53  ;;  %v1099_v53 = vrot.slane %v2756_v30, 1 }
 0x24b   : > { %v1992_v58 = vpop.eup %1991  ;;  %1235 = vmatpush.msra.mxu1 %v2780_v59 }
 0x24c   : > { %v937_v60 = vmul.f32 %v1992_v58, %v935_v50  ;;  %v917_v61 = vadd.f32 %v1990_v51, %v916_v56  ;;  %vm942_vm4 = vweird.f32 %v1992_v58 }
 0x24d   : > { %vm943_vm6 = vmor %vm941_vm5, %vm942_vm4 }
 0x24e   : > { %v938_v63 = vsub.f32 1.0, %v937_v60  ;;  %v921_v1 = vsel %vm920_vm2, %v1990_v51, %v917_v61 }
 0x24f   : > { %v926_v2 = vsel %vm923_vm3, %v925_v62, %v921_v1  ;;  %v2786_v62 = vld [vmem:[#allocation10 + $0xb0] sm:$0xff]  ;;  %v2796_v1 = vld [vmem:[#allocation10 + $0xa0] sm:$0xff] }
 0x250   : > { %v951_v3 = vmul.f32 %v926_v2, %v906_v0  ;;  %v939_v5 = vmul.f32 %v1992_v58, %v938_v63  ;;  %v2788_v63 = vld [vmem:[#allocation10 + $0xb8] sm:$0xff]  ;;  %v2802_v2 = vld [vmem:[#allocation10 + $0x80] sm:$0xff] }
 0x251   : > { %1236 = vmatpush.msra.mxu1 %v2788_v63  ;;  %v2794_v0 = vld [vmem:[#allocation10 + $0x98] sm:$0xff] }
 0x252   : > { %v954_v6 = vadd.f32 %v952_v4, %v951_v3  ;;  %v940_v7 = vadd.f32 %v1992_v58, %v939_v5  ;;  %v2804_v3 = vld [vmem:[#allocation10 + $0x88] sm:$0xff]  ;;  %v2812_v5 = vld [vmem:[#allocation10 + $0x70] sm:$0xff] }
 0x253   : > { %1237 = vmatpush.msra.mxu1 %v2796_v1  ;;  %v2810_v4 = vld [vmem:[#allocation10 + $0x68] sm:$0xff] }
 0x254   : > { %1993 = vtanh.f32 %v954_v6  ;;  %v944_v11 = vsel %vm943_vm6, %v1992_v58, %v940_v7  ;;  %v2778_v58 = vld [vmem:[#allocation10 + $0xc8] sm:$0xff]  ;;  %v2818_v6 = vld [vmem:[#allocation10 + $0x50] sm:$0xff]  ;;  %v2820_v7 = vld [vmem:[#allocation10 + $0x58] sm:$0xff] }
 0x255   : > { %v949_v21 = vsel %vm946_vm7, %v948_v14, %v944_v11  ;;  %1238 = vmatpush.msra.mxu1 %v2804_v3  ;;  %v2824_v11 = vld [vmem:[#allocation10 + $0x40] sm:$0xff] }
 0x257   : > { %1239 = vmatpush.msra.mxu1 %v2812_v5 }
 0x259   : > { %1240 = vmatpush.msra.mxu1 %v2820_v7 }
 0x25a   : > { %v1994_v13 = vpop.eup %1993 }
 0x25b   : > { %v956_v18 = vsub.f32 %v2605_v29, %v1994_v13  ;;  %v2719_v29 = vld [vmem:[#allocation10 + $0x158] sm:$0xff]  ;;  %1241 = vmatpush.msra.mxu1 %v2824_v11 }
 0x25c   : > { %1209 = vmatpush.msra.mxu0 %v2719_v29  ;;  %1379 = vmatpush.msra.mxu3 %v2719_v29 }
 0x25d   : > { %v957_v23 = vmul.f32 %v956_v18, %v949_v21  ;;  %v2832_v21 = vld [vmem:[#allocation10 + $0x20] sm:$0xff] }
 0x25e   : > { %1210 = vmatpush.msra.mxu0 %v2727_v16  ;;  %1380 = vmatpush.msra.mxu3 %v2727_v16 }
 0x25f   : > { %v2706_v26 = vadd.f32 %v1994_v13, %v957_v23  ;;  %v2834_v23 = vld [vmem:[#allocation10 + $0x28] sm:$0xff] }
 0x260   : > { %1211 = vmatpush.msra.mxu0 %v2740_v32  ;;  %1381 = vmatpush.msra.mxu3 %v2740_v32 }
 0x261   : > { %959 = vst [vmem:[%s2576_s17 + $0x2] sm:$0x1] %v2706_v26  ;;  %1034 = vmatmul.f32.vlgmr.msrb.gmra.mxu0 %v2706_v26  ;;  %1054 = vmatmul.f32.vlgmr.msrb.gmra.mxu1 %v2706_v26 }
 0x262   : > { %1074 = vmatmul.f32.vlgmr.msrb.gmra.mxu2 %v2706_v26  ;;  %1212 = vmatpush.msra.mxu0 %v2750_v19 }
 0x263   : > { %1548 = vmatpush.msrb.mxu2 %v2713_v39  ;;  %1382 = vmatpush.msra.mxu3 %v2750_v19 }
 0x264   : > { %1213 = vmatpush.msra.mxu0 %v2760_v38  ;;  %1242 = vmatpush.msra.mxu1 %v2834_v23 }
 0x265   : > { %1549 = vmatpush.msrb.mxu2 %v2719_v29  ;;  %1383 = vmatpush.msra.mxu3 %v2760_v38 }
 0x266   : > { %1214 = vmatpush.msra.mxu0 %v2769_v54 }
 0x267   : > { %1550 = vmatpush.msrb.mxu2 %v2727_v16  ;;  %1384 = vmatpush.msra.mxu3 %v2769_v54 }
 0x268   : > { %1215 = vmatpush.msra.mxu0 %v2778_v58 }
 0x269   : > { %1551 = vmatpush.msrb.mxu2 %v2740_v32  ;;  %1385 = vmatpush.msra.mxu3 %v2778_v58 }
 0x26a   : > { %1216 = vmatpush.msra.mxu0 %v2786_v62 }
 0x26b   : > { %1552 = vmatpush.msrb.mxu2 %v2750_v19  ;;  %1386 = vmatpush.msra.mxu3 %v2786_v62 }
 0x26c   : > { %1217 = vmatpush.msra.mxu0 %v2794_v0 }
 0x26d   : > { %1553 = vmatpush.msrb.mxu2 %v2760_v38  ;;  %1387 = vmatpush.msra.mxu3 %v2794_v0 }
 0x26e   : > { %1218 = vmatpush.msra.mxu0 %v2802_v2 }
 0x26f   : > { %1554 = vmatpush.msrb.mxu2 %v2769_v54  ;;  %1388 = vmatpush.msra.mxu3 %v2802_v2 }
 0x270   : > { %1219 = vmatpush.msra.mxu0 %v2810_v4 }
 0x271   : > { %1555 = vmatpush.msrb.mxu2 %v2778_v58  ;;  %1389 = vmatpush.msra.mxu3 %v2810_v4 }
 0x272   : > { %1220 = vmatpush.msra.mxu0 %v2818_v6 }
 0x273   : > { %1556 = vmatpush.msrb.mxu2 %v2786_v62  ;;  %1390 = vmatpush.msra.mxu3 %v2818_v6 }
 0x274   : > { %1221 = vmatpush.msra.mxu0 %v2822_v9 }
 0x275   : > { %1557 = vmatpush.msrb.mxu2 %v2794_v0  ;;  %1391 = vmatpush.msra.mxu3 %v2822_v9 }
 0x276   : > { %1222 = vmatpush.msra.mxu0 %v2832_v21 }
 0x277   : > { %1558 = vmatpush.msrb.mxu2 %v2802_v2  ;;  %1392 = vmatpush.msra.mxu3 %v2832_v21 }
 0x279   : > { %1559 = vmatpush.msrb.mxu2 %v2810_v4 }
 0x27b   : > { %1560 = vmatpush.msrb.mxu2 %v2818_v6 }
 0x27d   : > { %1561 = vmatpush.msrb.mxu2 %v2822_v9 }
 0x27f   : > { %1562 = vmatpush.msrb.mxu2 %v2832_v21 }
 0x2de   : > { %v1035_v49 = vpop.f32.mrf.mxu0  ;;  %v1055_v50 = vpop.f32.mrf.mxu1 }
 0x2df   : > { %v1036_v51 = vadd.f32 %v1035_v49, %v1012_v15  ;;  %v1056_v52 = vadd.f32 %v1055_v50, %v1013_v17  ;;  %v2841_v15 = vld [vmem:[#allocation10 + $0x8] sm:$0xff]  ;;  %v2843_v17 = vld [vmem:[#allocation10 + $0x10] sm:$0xff] }
 0x2e0   : > { %1223 = vmatpush.msra.mxu0 %v2841_v15  ;;  %1243 = vmatpush.msra.mxu1 %v2843_v17 }
 0x2e1   : > { %v1078_v56 = vadd.f32 %v1036_v51, %v2756_v30  ;;  %v1101_v57 = vadd.f32 %v1099_v53, %v1056_v52  ;;  %1393 = vmatpush.msra.mxu3 %v2841_v15  ;;  %1563 = vmatpush.msrb.mxu2 %v2841_v15 }
 0x2e2   : > { %1398 = vmatpush.msrb.mxu0 %v2715_v44  ;;  %1528 = vmatpush.msrb.mxu1 %v2612_v31 }
 0x2e3   : > { %v1909_v60 = vmul.f32 -1.442695, %v1078_v56  ;;  %v1910_v61 = vmul.f32 -1.442695, %v1101_v57  ;;  %v1014_v57 = vperm.slane %v2736_v28, 2 }
 0x2e4   : > { %1399 = vmatpush.msrb.mxu0 %v2721_v12  ;;  %1529 = vmatpush.msrb.mxu1 %v2616_v34 }
 0x2e5   : > { %1995 = vpow2.f32 %v1909_v60 }
 0x2e6   : > { %1997 = vpow2.f32 %v1910_v61  ;;  %1400 = vmatpush.msrb.mxu0 %v2729_v24  ;;  %1530 = vmatpush.msrb.mxu1 %v2621_v36  ;;  %v1075_v61 = vpop.f32.mrf.mxu2 }
 0x2e7   : > { %v1076_v36 = vadd.f32 %v1075_v61, %v1014_v57 }
 0x2e8   : > { %1401 = vmatpush.msrb.mxu0 %v2742_v40  ;;  %1531 = vmatpush.msrb.mxu1 %v2631_v42  ;;  %v1122_v42 = vrot.slane %v2756_v30, 2 }
 0x2ea   : > { %1402 = vmatpush.msrb.mxu0 %v2752_v25  ;;  %1532 = vmatpush.msrb.mxu1 %v2637_v46 }
 0x2eb   : > { %v1996_v8 = vpop.eup %1995 }
 0x2ec   : > { %v1998_v13 = vpop.eup %1997  ;;  %v1082_v14 = vadd.f32 1.0, %v1996_v8  ;;  %1403 = vmatpush.msrb.mxu0 %v2762_v43  ;;  %1533 = vmatpush.msrb.mxu1 %v2642_v10 }
 0x2ed   : > { %v2830_v18 = vadd.f32 1.0, %v1998_v13 }
 0x2ee   : > { %1999 = vrcp.f32 %v1082_v14  ;;  %v1094_v56 = vand.u32 2147483648, %v1082_v14  ;;  %v1092_v31 = vand.u32 2147483647, %v1082_v14  ;;  %vm1088_vm9 = vweird.f32 %v1082_v14  ;;  %1404 = vmatpush.msrb.mxu0 %v2771_v55  ;;  %1534 = vmatpush.msrb.mxu1 %v2647_v20 }
 0x2ef   : > { %2001 = vrcp.f32 %v2830_v18  ;;  %v1117_v10 = vand.u32 2147483648, %v2830_v18  ;;  %vm1111_vm13 = vweird.f32 %v2830_v18  ;;  %v1115_v20 = vand.u32 2147483647, %v2830_v18 }
 0x2f0   : > { %v1095_v13 = vor.u32 1.1754944e-38, %v1094_v56  ;;  %vm1093_vm11 = vcmp.eq.f32.partialorder %v1092_v31, 8.507059e+37  ;;  %1405 = vmatpush.msrb.mxu0 %v2780_v59  ;;  %1535 = vmatpush.msrb.mxu1 %v2656_v37 }
 0x2f1   : > { %vm1116_vm15 = vcmp.eq.f32.partialorder %v1115_v20, 8.507059e+37 }
 0x2f2   : > { %1406 = vmatpush.msrb.mxu0 %v2788_v63  ;;  %1536 = vmatpush.msrb.mxu1 %v2661_v48 }
 0x2f4   : > { %v2000_v49 = vpop.eup %1999  ;;  %1407 = vmatpush.msrb.mxu0 %v2796_v1  ;;  %1537 = vmatpush.msrb.mxu1 %v2667_v22 }
 0x2f5   : > { %v2002_v50 = vpop.eup %2001  ;;  %v1084_v51 = vmul.f32 %v2000_v49, %v1082_v14  ;;  %vm1089_vm8 = vweird.f32 %v2000_v49 }
 0x2f6   : > { %v1107_v53 = vmul.f32 %v2002_v50, %v2830_v18  ;;  %vm1090_vm10 = vmor %vm1088_vm9, %vm1089_vm8  ;;  %vm1112_vm12 = vweird.f32 %v2002_v50  ;;  %1408 = vmatpush.msrb.mxu0 %v2804_v3  ;;  %1538 = vmatpush.msrb.mxu1 %v2672_v27  ;;  %v1180_v27 = vld [vmem:[%s3001_s6] sm:$0x7] }
 0x2f7   : > { %v1085_v52 = vsub.f32 1.0, %v1084_v51  ;;  %vm1113_vm14 = vmor %vm1111_vm13, %vm1112_vm12 }
 0x2f8   : > { %v1108_v34 = vsub.f32 1.0, %v1107_v53  ;;  %1409 = vmatpush.msrb.mxu0 %v2812_v5  ;;  %1539 = vmatpush.msrb.mxu1 %v2677_v33  ;;  %v1183_v33 = vperm.slane %v1180_v27, 1 }
 0x2f9   : > { %v1086_v60 = vmul.f32 %v2000_v49, %v1085_v52 }
 0x2fa   : > { %v1109_v14 = vmul.f32 %v2002_v50, %v1108_v34  ;;  %1410 = vmatpush.msrb.mxu0 %v2820_v7  ;;  %1540 = vmatpush.msrb.mxu1 %v2681_v35  ;;  %v1131_v35 = vld [vmem:[#allocation3 + $0x4] ss:$8 sm:$0x7] }
 0x2fb   : > { %v1087_v8 = vadd.f32 %v2000_v49, %v1086_v60 }
 0x2fc   : > { %v1110_v46 = vadd.f32 %v2002_v50, %v1109_v14  ;;  %1411 = vmatpush.msrb.mxu0 %v2824_v11  ;;  %1541 = vmatpush.msrb.mxu1 %v2684_v41 }
 0x2fd   : > { %v1091_v51 = vsel %vm1090_vm10, %v2000_v49, %v1087_v8  ;;  %v1118_v49 = vor.u32 1.1754944e-38, %v1117_v10 }
 0x2fe   : > { %v1096_v28 = vsel %vm1093_vm11, %v1095_v13, %v1091_v51  ;;  %v1114_v37 = vsel %vm1113_vm14, %v2002_v50, %v1110_v46  ;;  %1412 = vmatpush.msrb.mxu0 %v2834_v23  ;;  %1542 = vmatpush.msrb.mxu1 %v2689_v45  ;;  %v1184_v50 = vperm.slane %v1180_v27, 2 }
 0x2ff   : > { %v1121_v52 = vmul.f32 %v1096_v28, %v1076_v36  ;;  %v1119_v56 = vsel %vm1116_vm15, %v1118_v49, %v1114_v37  ;;  %v1292_v28 = vrot.slane %v1131_v35, 2 }
 0x300   : > { %1413 = vmatpush.msrb.mxu0 %v2843_v17  ;;  %1543 = vmatpush.msrb.mxu1 %v2694_v47  ;;  %v1269_v47 = vrot.slane %v1131_v35, 1 }
 0x301   : > { %v1124_v53 = vadd.f32 %v1122_v42, %v1121_v52 }
 0x303   : > { %2003 = vtanh.f32 %v1124_v53 }
 0x309   : > { %v2004_v30 = vpop.eup %2003 }
 0x30a   : > { %v1126_v48 = vsub.f32 %v2706_v26, %v2004_v30 }
 0x30c   : > { %v1127_v22 = vmul.f32 %v1126_v48, %v1119_v56 }
 0x30e   : > { %v2889_v18 = vadd.f32 %v2004_v30, %v1127_v22 }
 0x310   : > { %1129 = vst [vmem:[%s2576_s17 + $0x3] sm:$0x1] %v2889_v18  ;;  %1204 = vmatmul.f32.vlgmr.msrb.gmra.mxu3 %v2889_v18  ;;  %1224 = vmatmul.f32.vlgmr.msra.gmra.mxu0 %v2889_v18 }
 0x311   : > { %1244 = vmatmul.f32.vlgmr.msra.gmra.mxu1 %v2889_v18  ;;  %1568 = vmatpush.msrb.mxu3 %v2715_v44 }
 0x312   : > { %1718 = vmatpush.msra.mxu1 %v2713_v39  ;;  %v1182_v39 = vperm.slane %v1180_v27, 0 }
 0x313   : > { %1569 = vmatpush.msrb.mxu3 %v2721_v12 }
 0x314   : > { %1719 = vmatpush.msra.mxu1 %v2719_v29 }
 0x315   : > { %1570 = vmatpush.msrb.mxu3 %v2729_v24 }
 0x316   : > { %1720 = vmatpush.msra.mxu1 %v2727_v16 }
 0x317   : > { %1571 = vmatpush.msrb.mxu3 %v2742_v40 }
 0x318   : > { %1721 = vmatpush.msra.mxu1 %v2740_v32 }
 0x319   : > { %1572 = vmatpush.msrb.mxu3 %v2752_v25 }
 0x31a   : > { %1722 = vmatpush.msra.mxu1 %v2750_v19 }
 0x31b   : > { %1573 = vmatpush.msrb.mxu3 %v2762_v43 }
 0x31c   : > { %1723 = vmatpush.msra.mxu1 %v2760_v38 }
 0x31d   : > { %1574 = vmatpush.msrb.mxu3 %v2771_v55 }
 0x31e   : > { %1724 = vmatpush.msra.mxu1 %v2769_v54 }
 0x31f   : > { %1575 = vmatpush.msrb.mxu3 %v2780_v59 }
 0x320   : > { %1725 = vmatpush.msra.mxu1 %v2778_v58 }
 0x321   : > { %1576 = vmatpush.msrb.mxu3 %v2788_v63 }
 0x322   : > { %1726 = vmatpush.msra.mxu1 %v2786_v62 }
 0x323   : > { %1577 = vmatpush.msrb.mxu3 %v2796_v1 }
 0x324   : > { %1727 = vmatpush.msra.mxu1 %v2794_v0 }
 0x325   : > { %1578 = vmatpush.msrb.mxu3 %v2804_v3 }
 0x326   : > { %1728 = vmatpush.msra.mxu1 %v2802_v2 }
 0x327   : > { %1579 = vmatpush.msrb.mxu3 %v2812_v5 }
 0x328   : > { %1729 = vmatpush.msra.mxu1 %v2810_v4 }
 0x329   : > { %1580 = vmatpush.msrb.mxu3 %v2820_v7 }
 0x32a   : > { %1730 = vmatpush.msra.mxu1 %v2818_v6 }
 0x32b   : > { %1581 = vmatpush.msrb.mxu3 %v2824_v11 }
 0x32c   : > { %1731 = vmatpush.msra.mxu1 %v2822_v9 }
 0x32d   : > { %1582 = vmatpush.msrb.mxu3 %v2834_v23 }
 0x32e   : > { %1732 = vmatpush.msra.mxu1 %v2832_v21 }
 0x32f   : > { %1583 = vmatpush.msrb.mxu3 %v2843_v17 }
 0x330   : > { %1733 = vmatpush.msra.mxu1 %v2841_v15 }
 0x38d   : > { %v1225_v41 = vpop.f32.mrf.mxu0 }
 0x38e   : > { %v1226_v45 = vadd.f32 %v1225_v41, %v1183_v33  ;;  %v1245_v31 = vpop.f32.mrf.mxu1 }
 0x38f   : > { %v1246_v13 = vadd.f32 %v1245_v31, %v1184_v50 }
 0x390   : > { %v1271_v26 = vadd.f32 %v1269_v47, %v1226_v45 }
 0x392   : > { %v1912_v29 = vmul.f32 -1.442695, %v1271_v26 }
 0x393   : > { %v1205_v16 = vpop.f32.mrf.mxu3 }
 0x394   : > { %v1206_v32 = vadd.f32 %v1205_v16, %v1182_v39  ;;  %2005 = vpow2.f32 %v1912_v29 }
 0x396   : > { %v1248_v19 = vadd.f32 %v1206_v32, %v1131_v35 }
 0x398   : > { %v1911_v38 = vmul.f32 -1.442695, %v1248_v19 }
 0x39a   : > { %2007 = vpow2.f32 %v1911_v38  ;;  %v2006_v54 = vpop.eup %2005 }
 0x39b   : > { %v1275_v62 = vadd.f32 1.0, %v2006_v54 }
 0x39d   : > { %v1287_v46 = vand.u32 2147483648, %v1275_v62  ;;  %vm1281_vm5 = vweird.f32 %v1275_v62  ;;  %v1285_v10 = vand.u32 2147483647, %v1275_v62 }
 0x39f   : > { %v1288_v30 = vor.u32 1.1754944e-38, %v1287_v46  ;;  %vm1286_vm7 = vcmp.eq.f32.partialorder %v1285_v10, 8.507059e+37  ;;  %v1672_v46 = vld [vmem:[#allocation10 + $0xf0] sm:$0xff] }
 0x3a0   : > { %v2008_v58 = vpop.eup %2007 }
 0x3a1   : > { %v1252_v0 = vadd.f32 1.0, %v2008_v58 }
 0x3a3   : > { %2009 = vrcp.f32 %v1252_v0  ;;  %v1264_v15 = vand.u32 2147483648, %v1252_v0  ;;  %v1262_v60 = vand.u32 2147483647, %v1252_v0  ;;  %vm1258_vm1 = vweird.f32 %v1252_v0 }
 0x3a4   : > { %2011 = vrcp.f32 %v1275_v62 }
 0x3a5   : > { %v1265_v34 = vor.u32 1.1754944e-38, %v1264_v15  ;;  %vm1263_vm3 = vcmp.eq.f32.partialorder %v1262_v60, 8.507059e+37 }
 0x3a9   : > { %v2010_v2 = vpop.eup %2009 }
 0x3aa   : > { %v2012_v4 = vpop.eup %2011  ;;  %v1254_v6 = vmul.f32 %v2010_v2, %v1252_v0  ;;  %vm1259_vm0 = vweird.f32 %v2010_v2 }
 0x3ab   : > { %v1277_v21 = vmul.f32 %v2012_v4, %v1275_v62  ;;  %vm1260_vm2 = vmor %vm1258_vm1, %vm1259_vm0  ;;  %vm1282_vm4 = vweird.f32 %v2012_v4 }
 0x3ac   : > { %v1255_v9 = vsub.f32 1.0, %v1254_v6  ;;  %vm1283_vm6 = vmor %vm1281_vm5, %vm1282_vm4 }
 0x3ad   : > { %v1278_v8 = vsub.f32 1.0, %v1277_v21 }
 0x3ae   : > { %v1256_v57 = vmul.f32 %v2010_v2, %v1255_v9 }
 0x3af   : > { %v1279_v42 = vmul.f32 %v2012_v4, %v1278_v8 }
 0x3b0   : > { %v1257_v61 = vadd.f32 %v2010_v2, %v1256_v57 }
 0x3b1   : > { %v1280_v53 = vadd.f32 %v2012_v4, %v1279_v42 }
 0x3b2   : > { %v1261_v36 = vsel %vm1260_vm2, %v2010_v2, %v1257_v61 }
 0x3b3   : > { %v1266_v51 = vsel %vm1263_vm3, %v1265_v34, %v1261_v36  ;;  %v1284_v20 = vsel %vm1283_vm6, %v2012_v4, %v1280_v53  ;;  %v1684_v36 = vld [vmem:[#allocation10 + $0x150] sm:$0xff] }
 0x3b4   : > { %v1291_v52 = vmul.f32 %v1266_v51, %v1246_v13  ;;  %v1289_v48 = vsel %vm1286_vm7, %v1288_v30, %v1284_v20  ;;  %v1687_v13 = vld [vmem:[#allocation10 + $0x168] sm:$0xff]  ;;  %v2974_v51 = vld [vmem:[%s3001_s6] sm:$0x7] }
 0x3b5   : > { %1698 = vmatpush.msra.mxu0 %v1687_v13  ;;  %v1522_v42 = vperm.slane %v2974_v51, 0  ;;  %v1471_v20 = vld [vmem:[#allocation3 + $0x6] ss:$8 sm:$0x7]  ;;  %v1690_v13 = vld [vmem:[%s3001_s6] sm:$0x7] }
 0x3b6   : > { %v1294_v14 = vadd.f32 %v1292_v28, %v1291_v52  ;;  %v1681_v28 = vld [vmem:[#allocation10 + $0x138] sm:$0xff]  ;;  %v1678_v52 = vld [vmem:[#allocation10 + $0x120] sm:$0xff] }
 0x3b7   : > { %1699 = vmatpush.msra.mxu0 %v1684_v36  ;;  %v1692_v36 = vperm.slane %v1690_v13, 0 }
 0x3b8   : > { %2013 = vtanh.f32 %v1294_v14  ;;  %v1675_v14 = vld [vmem:[#allocation10 + $0x108] sm:$0xff] }
 0x3b9   : > { %1700 = vmatpush.msra.mxu0 %v1681_v28 }
 0x3bb   : > { %1701 = vmatpush.msra.mxu0 %v1678_v52 }
 0x3bd   : > { %1702 = vmatpush.msra.mxu0 %v1675_v14 }
 0x3be   : > { %v2014_v37 = vpop.eup %2013 }
 0x3bf   : > { %v1296_v49 = vsub.f32 %v2889_v18, %v2014_v37  ;;  %1703 = vmatpush.msra.mxu0 %v1672_v46 }
 0x3c1   : > { %v1297_v56 = vmul.f32 %v1296_v49, %v1289_v48  ;;  %v1523_v49 = vperm.slane %v2974_v51, 1  ;;  %v1666_v48 = vld [vmem:[#allocation10 + $0xc0] sm:$0xff] }
 0x3c3   : > { %v2937_v22 = vadd.f32 %v2014_v37, %v1297_v56  ;;  %v1669_v37 = vld [vmem:[#allocation10 + $0xd8] sm:$0xff] }
 0x3c4   : > { %1704 = vmatpush.msra.mxu0 %v1669_v37 }
 0x3c5   : > { %1299 = vst [vmem:[%s2576_s17 + $0x4] sm:$0x1] %v2937_v22  ;;  %1374 = vmatmul.f32.vlgmr.msra.gmra.mxu2 %v2937_v22  ;;  %1394 = vmatmul.f32.vlgmr.msra.gmra.mxu3 %v2937_v22 }
 0x3c6   : > { %1414 = vmatmul.f32.vlgmr.msrb.gmra.mxu0 %v2937_v22  ;;  %1738 = vmatpush.msra.mxu2 %v2715_v44  ;;  %v1350_v44 = vld [vmem:[%s3001_s6] sm:$0x7] }
 0x3c7   : > { %v1354_v26 = vperm.slane %v1350_v44, 2  ;;  %1705 = vmatpush.msra.mxu0 %v1666_v48 }
 0x3c8   : > { %1739 = vmatpush.msra.mxu2 %v2721_v12  ;;  %v1352_v12 = vperm.slane %v1350_v44, 0 }
 0x3ca   : > { %1740 = vmatpush.msra.mxu2 %v2729_v24  ;;  %v1353_v24 = vperm.slane %v1350_v44, 1  ;;  %v1663_v44 = vld [vmem:[#allocation10 + $0xa8] sm:$0xff] }
 0x3cb   : > { %1706 = vmatpush.msra.mxu0 %v1663_v44 }
 0x3cc   : > { %1741 = vmatpush.msra.mxu2 %v2742_v40  ;;  %v1301_v40 = vld [vmem:[#allocation3 + $0x5] ss:$8 sm:$0x7] }
 0x3cd   : > { %v1462_v2 = vrot.slane %v1301_v40, 2 }
 0x3ce   : > { %1742 = vmatpush.msra.mxu2 %v2752_v25 }
 0x3d0   : > { %1743 = vmatpush.msra.mxu2 %v2762_v43 }
 0x3d2   : > { %1744 = vmatpush.msra.mxu2 %v2771_v55 }
 0x3d4   : > { %1745 = vmatpush.msra.mxu2 %v2780_v59 }
 0x3d6   : > { %1746 = vmatpush.msra.mxu2 %v2788_v63  ;;  %v1439_v63 = vrot.slane %v1301_v40, 1 }
 0x3d8   : > { %1747 = vmatpush.msra.mxu2 %v2796_v1 }
 0x3da   : > { %1748 = vmatpush.msra.mxu2 %v2804_v3 }
 0x3dc   : > { %1749 = vmatpush.msra.mxu2 %v2812_v5 }
 0x3de   : > { %1750 = vmatpush.msra.mxu2 %v2820_v7 }
 0x3e0   : > { %1751 = vmatpush.msra.mxu2 %v2824_v11 }
 0x3e2   : > { %1752 = vmatpush.msra.mxu2 %v2834_v23 }
 0x3e4   : > { %1753 = vmatpush.msra.mxu2 %v2843_v17 }
 0x443   : > { %v1415_v16 = vpop.f32.mrf.mxu0 }
 0x444   : > { %v1416_v54 = vadd.f32 %v1415_v16, %v1354_v26 }
 0x448   : > { %v1375_v25 = vpop.f32.mrf.mxu2  ;;  %v1395_v43 = vpop.f32.mrf.mxu3 }
 0x449   : > { %v1376_v55 = vadd.f32 %v1375_v25, %v1352_v12  ;;  %v1396_v59 = vadd.f32 %v1395_v43, %v1353_v24  ;;  %v1609_v24 = vrot.slane %v1471_v20, 1  ;;  %v1657_v43 = vld [vmem:[#allocation10 + $0x78] sm:$0xff] }
 0x44b   : > { %v1418_v1 = vadd.f32 %v1376_v55, %v1301_v40  ;;  %v1441_v3 = vadd.f32 %v1439_v63, %v1396_v59  ;;  %v1660_v40 = vld [vmem:[#allocation10 + $0x90] sm:$0xff]  ;;  %v1654_v59 = vld [vmem:[#allocation10 + $0x60] sm:$0xff]  ;;  %v1651_v63 = vld [vmem:[#allocation10 + $0x48] sm:$0xff] }
 0x44c   : > { %1707 = vmatpush.msra.mxu0 %v1660_v40 }
 0x44d   : > { %v1913_v5 = vmul.f32 -1.442695, %v1418_v1  ;;  %v1914_v7 = vmul.f32 -1.442695, %v1441_v3 }
 0x44e   : > { %1708 = vmatpush.msra.mxu0 %v1657_v43  ;;  %v1694_v43 = vperm.slane %v1690_v13, 2 }
 0x44f   : > { %2015 = vpow2.f32 %v1913_v5  ;;  %v1648_v5 = vld [vmem:[#allocation10 + $0x30] sm:$0xff] }
 0x450   : > { %2017 = vpow2.f32 %v1914_v7  ;;  %1709 = vmatpush.msra.mxu0 %v1654_v59  ;;  %v1645_v7 = vld [vmem:[#allocation10 + $0x18] sm:$0xff] }
 0x452   : > { %1710 = vmatpush.msra.mxu0 %v1651_v63 }
 0x454   : > { %1711 = vmatpush.msra.mxu0 %v1648_v5 }
 0x455   : > { %v2016_v11 = vpop.eup %2015 }
 0x456   : > { %v2018_v23 = vpop.eup %2017  ;;  %v1422_v17 = vadd.f32 1.0, %v2016_v11  ;;  %v1642_v11 = vld [vmem:[#allocation10] sm:$0xff]  ;;  %1712 = vmatpush.msra.mxu0 %v1645_v7 }
 0x457   : > { %v1445_v18 = vadd.f32 1.0, %v2018_v23 }
 0x458   : > { %2019 = vrcp.f32 %v1422_v17  ;;  %v1434_v45 = vand.u32 2147483648, %v1422_v17  ;;  %v1432_v29 = vand.u32 2147483647, %v1422_v17  ;;  %vm1428_vm9 = vweird.f32 %v1422_v17  ;;  %1713 = vmatpush.msra.mxu0 %v1642_v11 }
 0x459   : > { %2021 = vrcp.f32 %v1445_v18  ;;  %v1457_v21 = vand.u32 2147483648, %v1445_v18  ;;  %vm1451_vm13 = vweird.f32 %v1445_v18  ;;  %v1455_v15 = vand.u32 2147483647, %v1445_v18 }
 0x45a   : > { %v1435_v19 = vor.u32 1.1754944e-38, %v1434_v45  ;;  %vm1433_vm11 = vcmp.eq.f32.partialorder %v1432_v29, 8.507059e+37 }
 0x45b   : > { %v1458_v60 = vor.u32 1.1754944e-38, %v1457_v21  ;;  %vm1456_vm15 = vcmp.eq.f32.partialorder %v1455_v15, 8.507059e+37 }
 0x45e   : > { %v2020_v27 = vpop.eup %2019 }
 0x45f   : > { %v2022_v33 = vpop.eup %2021  ;;  %v1424_v35 = vmul.f32 %v2020_v27, %v1422_v17  ;;  %vm1429_vm8 = vweird.f32 %v2020_v27 }
 0x460   : > { %v1447_v47 = vmul.f32 %v2022_v33, %v1445_v18  ;;  %vm1430_vm10 = vmor %vm1428_vm9, %vm1429_vm8  ;;  %vm1452_vm12 = vweird.f32 %v2022_v33 }
 0x461   : > { %v1425_v41 = vsub.f32 1.0, %v1424_v35  ;;  %vm1453_vm14 = vmor %vm1451_vm13, %vm1452_vm12 }
 0x462   : > { %v1448_v38 = vsub.f32 1.0, %v1447_v47 }
 0x463   : > { %v1426_v39 = vmul.f32 %v2020_v27, %v1425_v41  ;;  %v1524_v41 = vperm.slane %v2974_v51, 2  ;;  %v1693_v51 = vperm.slane %v1690_v13, 1 }
 0x464   : > { %v1449_v4 = vmul.f32 %v2022_v33, %v1448_v38 }
 0x465   : > { %v1427_v32 = vadd.f32 %v2020_v27, %v1426_v39 }
 0x466   : > { %v1450_v9 = vadd.f32 %v2022_v33, %v1449_v4 }
 0x467   : > { %v1431_v58 = vsel %vm1430_vm10, %v2020_v27, %v1427_v32 }
 0x468   : > { %v1436_v62 = vsel %vm1433_vm11, %v1435_v19, %v1431_v58  ;;  %v1454_v50 = vsel %vm1453_vm14, %v2022_v33, %v1450_v9 }
 0x469   : > { %v1461_v0 = vmul.f32 %v1436_v62, %v1416_v54  ;;  %v1459_v61 = vsel %vm1456_vm15, %v1458_v60, %v1454_v50 }
 0x46b   : > { %v1464_v6 = vadd.f32 %v1462_v2, %v1461_v0  ;;  %v1632_v0 = vrot.slane %v1471_v20, 2 }
 0x46d   : > { %2023 = vtanh.f32 %v1464_v6 }
 0x473   : > { %v2024_v57 = vpop.eup %2023 }
 0x474   : > { %v1466_v31 = vsub.f32 %v2937_v22, %v2024_v57 }
 0x476   : > { %v1467_v8 = vmul.f32 %v1466_v31, %v1459_v61 }
 0x478   : > { %v2964_v34 = vadd.f32 %v2024_v57, %v1467_v8 }
 0x47a   : > { %1469 = vst [vmem:[%s2576_s17 + $0x5] sm:$0x1] %v2964_v34  ;;  %1544 = vmatmul.f32.vlgmr.msrb.gmra.mxu1 %v2964_v34  ;;  %1564 = vmatmul.f32.vlgmr.msrb.gmra.mxu2 %v2964_v34 }
 0x47b   : > { %1584 = vmatmul.f32.vlgmr.msrb.gmra.mxu3 %v2964_v34 }
 0x4f7   : > { %v1545_v53 = vpop.f32.mrf.mxu1 }
 0x4f8   : > { %v1546_v10 = vadd.f32 %v1545_v53, %v1522_v42 }
 0x4fa   : > { %v1588_v30 = vadd.f32 %v1546_v10, %v1471_v20 }
 0x4fc   : > { %v1915_v56 = vmul.f32 -1.442695, %v1588_v30 }
 0x4fd   : > { %v1565_v22 = vpop.f32.mrf.mxu2 }
 0x4fe   : > { %2025 = vpow2.f32 %v1915_v56  ;;  %v1566_v12 = vadd.f32 %v1565_v22, %v1523_v49  ;;  %v1585_v39 = vpop.f32.mrf.mxu3 }
 0x4ff   : > { %v1586_v38 = vadd.f32 %v1585_v39, %v1524_v41 }
 0x500   : > { %v1611_v25 = vadd.f32 %v1609_v24, %v1566_v12 }
 0x502   : > { %v1916_v55 = vmul.f32 -1.442695, %v1611_v25 }
 0x504   : > { %v2026_v1 = vpop.eup %2025  ;;  %2027 = vpow2.f32 %v1916_v55 }
 0x505   : > { %v1592_v3 = vadd.f32 1.0, %v2026_v1 }
 0x507   : > { %2029 = vrcp.f32 %v1592_v3  ;;  %v1604_v35 = vand.u32 2147483648, %v1592_v3  ;;  %v1602_v47 = vand.u32 2147483647, %v1592_v3  ;;  %vm1598_vm1 = vweird.f32 %v1592_v3 }
 0x509   : > { %v1605_v32 = vor.u32 1.1754944e-38, %v1604_v35  ;;  %vm1603_vm3 = vcmp.eq.f32.partialorder %v1602_v47, 8.507059e+37 }
 0x50a   : > { %v2028_v23 = vpop.eup %2027 }
 0x50b   : > { %v1615_v17 = vadd.f32 1.0, %v2028_v23 }
 0x50d   : > { %v2030_v18 = vpop.eup %2029  ;;  %2031 = vrcp.f32 %v1615_v17  ;;  %v1627_v9 = vand.u32 2147483648, %v1615_v17  ;;  %vm1621_vm5 = vweird.f32 %v1615_v17  ;;  %v1625_v21 = vand.u32 2147483647, %v1615_v17 }
 0x50e   : > { %v1594_v27 = vmul.f32 %v2030_v18, %v1592_v3  ;;  %vm1599_vm0 = vweird.f32 %v2030_v18 }
 0x50f   : > { %vm1600_vm2 = vmor %vm1598_vm1, %vm1599_vm0  ;;  %v1628_v57 = vor.u32 1.1754944e-38, %v1627_v9  ;;  %vm1626_vm7 = vcmp.eq.f32.partialorder %v1625_v21, 8.507059e+37 }
 0x510   : > { %v1595_v33 = vsub.f32 1.0, %v1594_v27 }
 0x512   : > { %v1596_v45 = vmul.f32 %v2030_v18, %v1595_v33 }
 0x513   : > { %v2032_v26 = vpop.eup %2031 }
 0x514   : > { %v1617_v29 = vmul.f32 %v2032_v26, %v1615_v17  ;;  %v1597_v16 = vadd.f32 %v2030_v18, %v1596_v45  ;;  %vm1622_vm4 = vweird.f32 %v2032_v26 }
 0x515   : > { %vm1623_vm6 = vmor %vm1621_vm5, %vm1622_vm4 }
 0x516   : > { %v1618_v19 = vsub.f32 1.0, %v1617_v29  ;;  %v1601_v54 = vsel %vm1600_vm2, %v2030_v18, %v1597_v16 }
 0x517   : > { %v1606_v58 = vsel %vm1603_vm3, %v1605_v32, %v1601_v54 }
 0x518   : > { %v1631_v62 = vmul.f32 %v1606_v58, %v1586_v38  ;;  %v1619_v2 = vmul.f32 %v2032_v26, %v1618_v19 }
 0x51a   : > { %v1634_v4 = vadd.f32 %v1632_v0, %v1631_v62  ;;  %v1620_v6 = vadd.f32 %v2032_v26, %v1619_v2 }
 0x51c   : > { %2033 = vtanh.f32 %v1634_v4  ;;  %v1624_v15 = vsel %vm1623_vm6, %v2032_v26, %v1620_v6 }
 0x51d   : > { %v1629_v31 = vsel %vm1626_vm7, %v1628_v57, %v1624_v15 }
 0x522   : > { %v2034_v50 = vpop.eup %2033 }
 0x523   : > { %v1636_v60 = vsub.f32 %v2964_v34, %v2034_v50  ;;  %v1641_v34 = vld [vmem:[#allocation3 + $0x7] ss:$8 sm:$0x7] }
 0x524   : > { %v1779_v53 = vrot.slane %v1641_v34, 1  ;;  %v1802_v18 = vrot.slane %v1641_v34, 2 }
 0x525   : > { %v1637_v61 = vmul.f32 %v1636_v60, %v1629_v31 }
 0x527   : > { %v2980_v8 = vadd.f32 %v2034_v50, %v1637_v61 }
 0x529   : > { %1639 = vst [vmem:[%s2576_s17 + $0x6] sm:$0x1] %v2980_v8  ;;  %1714 = vmatmul.f32.vlgmr.msra.gmra.mxu0 %v2980_v8  ;;  %1734 = vmatmul.f32.vlgmr.msra.gmra.mxu1 %v2980_v8 }
 0x52a   : > { %1754 = vmatmul.f32.vlgmr.msra.gmra.mxu2 %v2980_v8 }
 0x5a6   : > { %v1715_v28 = vpop.f32.mrf.mxu0  ;;  %v1735_v52 = vpop.f32.mrf.mxu1 }
 0x5a7   : > { %v1716_v42 = vadd.f32 %v1715_v28, %v1692_v36  ;;  %v1736_v14 = vadd.f32 %v1735_v52, %v1693_v51 }
 0x5a9   : > { %v1758_v46 = vadd.f32 %v1716_v42, %v1641_v34  ;;  %v1781_v10 = vadd.f32 %v1779_v53, %v1736_v14 }
 0x5ab   : > { %v1917_v20 = vmul.f32 -1.442695, %v1758_v46  ;;  %v1918_v37 = vmul.f32 -1.442695, %v1781_v10 }
 0x5ad   : > { %2035 = vpow2.f32 %v1917_v20  ;;  %v1755_v63 = vpop.f32.mrf.mxu2 }
 0x5ae   : > { %2037 = vpow2.f32 %v1918_v37  ;;  %v1756_v7 = vadd.f32 %v1755_v63, %v1694_v43 }
 0x5b3   : > { %v2036_v30 = vpop.eup %2035 }
 0x5b4   : > { %v2038_v49 = vpop.eup %2037  ;;  %v1762_v48 = vadd.f32 1.0, %v2036_v30 }
 0x5b5   : > { %v1785_v56 = vadd.f32 1.0, %v2038_v49 }
 0x5b6   : > { %2039 = vrcp.f32 %v1762_v48  ;;  %v1774_v25 = vand.u32 2147483648, %v1762_v48  ;;  %v1772_v59 = vand.u32 2147483647, %v1762_v48  ;;  %vm1768_vm9 = vweird.f32 %v1762_v48 }
 0x5b7   : > { %2041 = vrcp.f32 %v1785_v56  ;;  %v1797_v41 = vand.u32 2147483648, %v1785_v56  ;;  %vm1791_vm13 = vweird.f32 %v1785_v56  ;;  %v1795_v45 = vand.u32 2147483647, %v1785_v56 }
 0x5b8   : > { %v1775_v5 = vor.u32 1.1754944e-38, %v1774_v25  ;;  %vm1773_vm11 = vcmp.eq.f32.partialorder %v1772_v59, 8.507059e+37 }
 0x5b9   : > { %v1798_v39 = vor.u32 1.1754944e-38, %v1797_v41  ;;  %vm1796_vm15 = vcmp.eq.f32.partialorder %v1795_v45, 8.507059e+37 }
 0x5bc   : > { %v2040_v22 = vpop.eup %2039 }
 0x5bd   : > { %v2042_v44 = vpop.eup %2041  ;;  %v1764_v12 = vmul.f32 %v2040_v22, %v1762_v48  ;;  %vm1769_vm8 = vweird.f32 %v2040_v22 }
 0x5be   : > { %v1787_v40 = vmul.f32 %v2042_v44, %v1785_v56  ;;  %vm1770_vm10 = vmor %vm1768_vm9, %vm1769_vm8  ;;  %vm1792_vm12 = vweird.f32 %v2042_v44 }
 0x5bf   : > { %v1765_v24 = vsub.f32 1.0, %v1764_v12  ;;  %vm1793_vm14 = vmor %vm1791_vm13, %vm1792_vm12 }
 0x5c0   : > { %v1788_v3 = vsub.f32 1.0, %v1787_v40 }
 0x5c1   : > { %v1766_v55 = vmul.f32 %v2040_v22, %v1765_v24 }
 0x5c2   : > { %v1789_v27 = vmul.f32 %v2042_v44, %v1788_v3 }
 0x5c3   : > { %v1767_v1 = vadd.f32 %v2040_v22, %v1766_v55 }
 0x5c4   : > { %v1790_v35 = vadd.f32 %v2042_v44, %v1789_v27 }
 0x5c5   : > { %v1771_v11 = vsel %vm1770_vm10, %v2040_v22, %v1767_v1 }
 0x5c6   : > { %v1776_v23 = vsel %vm1773_vm11, %v1775_v5, %v1771_v11  ;;  %v1794_v47 = vsel %vm1793_vm14, %v2042_v44, %v1790_v35 }
 0x5c7   : > { %v1801_v17 = vmul.f32 %v1776_v23, %v1756_v7  ;;  %v1799_v16 = vsel %vm1796_vm15, %v1798_v39, %v1794_v47 }
 0x5c9   : > { %v1804_v33 = vadd.f32 %v1802_v18, %v1801_v17 }
 0x5cb   : > { %2043 = vtanh.f32 %v1804_v33 }
 0x5d1   : > { %v2044_v26 = vpop.eup %2043 }
 0x5d2   : > { %v1806_v29 = vsub.f32 %v2980_v8, %v2044_v26 }
 0x5d4   : > { %v1807_v32 = vmul.f32 %v1806_v29, %v1799_v16 }
 0x5d6   : > { %v1808_v19 = vadd.f32 %v2044_v26, %v1807_v32 }
 0x5d8   : > { %1809 = vst [vmem:[%s2576_s17 + $0x7] sm:$0x1] %v1808_v19 }
 0x5d9 PF: > { %s27_s28 = sadd.s32 1, %s2163_s28  }
 0x5da   : > { %p24_p7 = scmp.ge.s32.totalorder %s27_s28, 4  }
 0x5dc   :  { %26 = sbr.rel (!%p24_p7) target bundleno = 8 (0x8), region = 100 }
 0x5e1   :  { %1829 = vsyncpa [#allocation7], 1 }
 0x5e2   :  { %1831 = vsyncpa [#allocation7 + $0x1], 1 }
 0x5e3   :  { %1832 = vsyncpa [#allocation9], 1 }

</bundles_post_ra>
